<compile_context>
chip_gen: v7x
topology: tpu7x:2x2x1
jax: 0.10.0
libtpu: 0.0.40
codegen_flags: <defaults>
</compile_context>

<pallas_src>
import jax
import jax.numpy as jnp
import numpy as np
from jax import lax
from jax.experimental import pallas as pl
from jax.experimental.pallas import tpu as pltpu

C = 32             # channels (must be divisible by RATIO and by 8)
RATIO = 16
CR = C // RATIO    # hidden width of the channel-attention MLP
CRP = max(CR, 8)   # hidden width padded to one full sublane group (exact: ReLU(0)=0)
K = 7              # spatial-attention conv kernel size
PAD = (K - 1) // 2


def _pick_batch_tile(B):
    # >= 8 rows per MXU matmul when the batch allows; otherwise split into
    # (at least) two grid steps so both v7x TensorCores get a "parallel" step.
    if B >= 16:
        return 8
    return max(1, (B + 1) // 2)


def _make_kernel(BT, CH, DHW, mxu_dtype):
    def kernel(x_ref, w1_ref, w2_ref, m_hbm, o_ref, m_vmem, m_sem):
        # x_ref : (BT, CH, DHW)  lane-dense tile for BT batch samples (f32)
        # w1_ref: (CH, CRP)      Linear1 weight^T, hidden dim zero-padded
        # w2_ref: (CRP, CH)      Linear2 weight^T, hidden dim zero-padded
        # m_hbm : (2, DHW, DHW)  dense Toeplitz form of the 7x7x7 conv (in HBM)
        # o_ref : (BT, CH, DHW)
        # Kick off the Toeplitz fetch immediately; it overlaps with the whole
        # channel-attention phase and is awaited only right before the spatial dot.
        m_copy = pltpu.make_async_copy(m_hbm, m_vmem, m_sem)
        m_copy.start()

        x = x_ref[...]                                   # (BT, CH, DHW) f32

        # ---------------- Channel attention (batched over BT) ----------------
        pmax = jnp.max(x, axis=-1)                       # (BT, CH)   AdaptiveMaxPool3d(1)
        pavg = jnp.mean(x, axis=-1)                      # (BT, CH)   AdaptiveAvgPool3d(1)
        p = jnp.concatenate([pmax, pavg], axis=0)        # (2*BT, CH)
        h = jnp.maximum(
            jnp.dot(p, w1_ref[...], preferred_element_type=jnp.float32), 0.0)  # (2*BT, CRP)
        o = jnp.dot(h, w2_ref[...], preferred_element_type=jnp.float32)        # (2*BT, CH)
        s = jax.nn.sigmoid(o[:BT] + o[BT:])              # (BT, CH)   MLP(max)+MLP(avg)
        x1 = x * s[:, :, None]                           # (BT, CH, DHW)

        # ---------------- Spatial attention ----------------
        cmax = jnp.max(x1, axis=1)                       # (BT, DHW)  max over channels
        cavg = jnp.mean(x1, axis=1)                      # (BT, DHW)  mean over channels

        m_copy.wait()                                    # Toeplitz now resident in VMEM
        # Conv3d(2 -> 1, k=7, stride=1, pad=3, bias=False) == two half MXU
        # matmuls against the precomputed dense Toeplitz halves (no concat).
        acc = (jnp.dot(cmax.astype(mxu_dtype), m_vmem[0],
                       preferred_element_type=jnp.float32)
               + jnp.dot(cavg.astype(mxu_dtype), m_vmem[1],
                         preferred_element_type=jnp.float32))   # (BT, DHW) f32
        attn = jax.nn.sigmoid(acc)                       # (BT, DHW)

        o_ref[...] = x1 * attn[:, None, :]               # (BT, CH, DHW), lane-dense store
    return kernel


# TODO(synk): for large volumes the dense Toeplitz is O(DHW^2) bytes (hits v7x's
# 64 MiB VMEM first); replace with a banded per-(kd,kh) matmul + output-axis tiling.
def _build_conv_toeplitz(cw, D, H, W, dtype):
    """Dense (2, DHW, DHW) matrix M with conv3d([max|avg], cw, pad=3)[o] == sum_j in[c,j]*M[c,j,o]."""
    DHW = D * H * W
    d, h, w = np.meshgrid(np.arange(D), np.arange(H), np.arange(W), indexing="ij")
    pos = np.stack([d.ravel(), h.ravel(), w.ravel()], axis=1)          # (DHW, 3)
    off = pos[:, None, :] - pos[None, :, :] + PAD                      # (in j, out o, 3)
    valid = np.all((off >= 0) & (off < K), axis=-1)                    # (DHW, DHW)
    offc = np.clip(off, 0, K - 1)
    kd, kh, kw = offc[..., 0], offc[..., 1], offc[..., 2]
    w4 = jnp.asarray(cw, jnp.float32).reshape(2, K, K, K)
    m = w4[:, kd, kh, kw] * jnp.asarray(valid, jnp.float32)[None]      # (2, DHW, DHW)
    return m.astype(dtype)


def cbam_forward(x, w1, w2, cw, *, mxu_dtype=jnp.bfloat16, batch_tile=None):
    """x: (B, C, D, H, W) f32.  w1: (CR, C), w2: (C, CR), cw: (1, 2, K, K, K)."""
    B, ch, D, H, W = x.shape
    assert ch == C and w1.shape == (CR, C) and w2.shape == (C, CR)
    assert cw.shape == (1, 2, K, K, K)
    DHW = D * H * W
    assert DHW % 128 == 0 and C % 8 == 0, "lane/sublane divisibility for this layout"

    BT = batch_tile if batch_tile is not None else _pick_batch_tile(B)
    steps = -(-B // BT)
    Bp = steps * BT

    x2 = jnp.asarray(x, jnp.float32).reshape(B, C, DHW)                # lane-dense slab
    if Bp != B:                                                        # pad batch to a tile multiple
        x2 = jnp.concatenate([x2, jnp.zeros((Bp - B, C, DHW), jnp.float32)], axis=0)

    # MLP weights transposed + hidden dim zero-padded to CRP sublanes (exact: ReLU(0)=0).
    w1t = jnp.zeros((C, CRP), jnp.float32).at[:, :CR].set(jnp.asarray(w1, jnp.float32).T)
    w2t = jnp.zeros((CRP, C), jnp.float32).at[:CR, :].set(jnp.asarray(w2, jnp.float32).T)

    m = _build_conv_toeplitz(cw, D, H, W, mxu_dtype)                   # (2, DHW, DHW)
    m_bytes = 2 * DHW * DHW * jnp.dtype(mxu_dtype).itemsize

    cost = pl.CostEstimate(
        flops=int(Bp * (4 * DHW * DHW + 8 * C * CRP + 10 * C * DHW)),
        transcendentals=int(Bp * (C + DHW)),
        bytes_accessed=int(2 * Bp * C * DHW * 4 + steps * m_bytes),
    )

    # x + out double-buffered (f32) + single-buffered Toeplitz scratch + slack.
    vmem_need = 4 * BT * C * DHW * 4 + m_bytes + (2 << 20)
    params = pltpu.CompilerParams(
        dimension_semantics=("parallel",),
        vmem_limit_bytes=int(min(64 << 20, max(vmem_need, 32 << 20))),
    )

    out2 = pl.pallas_call(
        _make_kernel(BT, C, DHW, mxu_dtype),
        out_shape=jax.ShapeDtypeStruct((Bp, C, DHW), jnp.float32),
        grid=(steps,),
        in_specs=[
            pl.BlockSpec((BT, C, DHW), lambda b: (b, 0, 0)),
            pl.BlockSpec((C, CRP), lambda b: (0, 0)),
            pl.BlockSpec((CRP, C), lambda b: (0, 0)),
            pl.BlockSpec(memory_space=pl.ANY),            # Toeplitz stays in HBM; manual DMA
        ],
        out_specs=pl.BlockSpec((BT, C, DHW), lambda b: (b, 0, 0)),
        scratch_shapes=[
            pltpu.VMEM((2, DHW, DHW), mxu_dtype),         # single-buffered Toeplitz copy
            pltpu.SemaphoreType.DMA,
        ],
        compiler_params=params,
        cost_estimate=cost,
    )(x2, w1t, w2t, m)

    return out2[:B].reshape(B, C, D, H, W)


def cbam_reference(x, w1, w2, cw):
    """Pure-JAX f32 reference matching the PyTorch CBAM_Block forward."""
    mx = jnp.max(x, axis=(2, 3, 4))
    av = jnp.mean(x, axis=(2, 3, 4))

    def mlp(p):
        return jnp.maximum(p @ w1.T, 0.0) @ w2.T

    s = jax.nn.sigmoid(mlp(mx) + mlp(av))                 # (B, C)
    x1 = x * s[:, :, None, None, None]
    cmax = jnp.max(x1, axis=1, keepdims=True)
    cavg = jnp.mean(x1, axis=1, keepdims=True)
    cat = jnp.concatenate([cmax, cavg], axis=1)           # (B, 2, D, H, W)
    conv = lax.conv_general_dilated(
        cat, cw, window_strides=(1, 1, 1), padding=[(PAD, PAD)] * 3,
        dimension_numbers=("NCDHW", "OIDHW", "NCDHW"))
    attn = jax.nn.sigmoid(conv)
    return x1 * attn


if __name__ == "__main__":
    key = jax.random.PRNGKey(0)
    kx, k1, k2, kc = jax.random.split(key, 4)

    B, D, H, W = 8, 4, 8, 8
    x = jax.random.normal(kx, (B, C, D, H, W), jnp.float32)

    # Deterministic synthetic parameters (shapes from the module's __init__).
    w1 = jax.random.normal(k1, (CR, C), jnp.float32) * (1.0 / jnp.sqrt(C))   # Linear(C, C//ratio)
    w2 = jax.random.normal(k2, (C, CR), jnp.float32) * (1.0 / jnp.sqrt(CR))  # Linear(C//ratio, C)
    cw = jax.random.normal(kc, (1, 2, K, K, K), jnp.float32) * 0.05          # Conv3d(2, 1, 7)

    out = jax.block_until_ready(cbam_forward(x, w1, w2, cw))
    ref = jax.block_until_ready(cbam_reference(x, w1, w2, cw))
    # bf16 MXU operands in the 686-tap spatial conv => ~1e-2 worst-case deviation
    # from the f32 reference (an f32 run, mxu_dtype=jnp.float32, matches to 2e-3).
    np.testing.assert_allclose(np.asarray(out), np.asarray(ref), rtol=3e-2, atol=3e-2)
    print("KERNEL_OK")
</pallas_src>

<mosaic_0001>
module attributes {stable_mosaic.version = 11 : i64} {
  func.func @kernel(%arg0: i32, %arg1: memref<4x32x256xf32, #tpu.memory_space<vmem>>, %arg2: memref<32x8xf32, #tpu.memory_space<vmem>>, %arg3: memref<8x32xf32, #tpu.memory_space<vmem>>, %arg4: memref<2x256x256xbf16, #tpu.memory_space<any>>, %arg5: memref<4x32x256xf32, #tpu.memory_space<vmem>>, %arg6: memref<2x256x256xbf16, #tpu.memory_space<vmem>>, %arg7: memref<!tpu.dma_semaphore, #tpu.memory_space<semaphore_mem>>) attributes {dimension_semantics = [#tpu.dimension_semantics<parallel>], iteration_bounds = array<i64: 2>, scalar_prefetch = 0 : i64, scratch_operands = 2 : i64, tpu.core_type = #tpu.core_type<tc>, window_params = [{transform_indices = @transform_0, window_bounds = array<i64: 4, 32, 256>}, {pipeline_mode = #tpu.pipeline_mode<synchronous>, transform_indices = @transform_1, window_bounds = array<i64: 32, 8>}, {pipeline_mode = #tpu.pipeline_mode<synchronous>, transform_indices = @transform_2, window_bounds = array<i64: 8, 32>}, {}, {transform_indices = @transform_4, window_bounds = array<i64: 4, 32, 256>}]} {
    tpu.enqueue_dma source(%arg4 : memref<2x256x256xbf16, #tpu.memory_space<any>>) target(%arg6 : memref<2x256x256xbf16, #tpu.memory_space<vmem>>) target_semaphore(%arg7 : memref<!tpu.dma_semaphore, #tpu.memory_space<semaphore_mem>>)
    %c0 = arith.constant 0 : index
    %c0_0 = arith.constant 0 : index
    %c0_1 = arith.constant 0 : index
    %0 = vector.load %arg1[%c0, %c0_0, %c0_1] : memref<4x32x256xf32, #tpu.memory_space<vmem>>, vector<4x32x256xf32>
    %cst = arith.constant dense<0xFF800000> : vector<4x32xf32>
    %1 = vector.multi_reduction <maximumf>, %0, %cst [2] : vector<4x32x256xf32> to vector<4x32xf32>
    %cst_2 = arith.constant dense<0.000000e+00> : vector<4x32xf32>
    %2 = vector.multi_reduction <add>, %0, %cst_2 [2] : vector<4x32x256xf32> to vector<4x32xf32>
    %cst_3 = arith.constant 2.560000e+02 : f32
    %3 = vector.broadcast %cst_3 : f32 to vector<4x32xf32>
    %4 = arith.divf %2, %3 : vector<4x32xf32>
    %5 = tpu.concatenate %1, %4 in 0 : vector<4x32xf32>, vector<4x32xf32> -> vector<8x32xf32>
    %c0_4 = arith.constant 0 : index
    %c0_5 = arith.constant 0 : index
    %6 = vector.load %arg2[%c0_4, %c0_5] : memref<32x8xf32, #tpu.memory_space<vmem>>, vector<32x8xf32>
    %cst_6 = arith.constant dense<0.000000e+00> : vector<8x8xf32>
    %7 = tpu.matmul %5, %6, %cst_6 {dimension_numbers = #tpu.dot_dimension_numbers<[1], [0], [0], [1], [0, 0, 1, 1], [], []>} : vector<8x32xf32>, vector<32x8xf32>, vector<8x8xf32> -> vector<8x8xf32>
    %cst_7 = arith.constant 0.000000e+00 : f32
    %8 = vector.broadcast %cst_7 : f32 to vector<8x8xf32>
    %9 = arith.maximumf %7, %8 : vector<8x8xf32>
    %c0_8 = arith.constant 0 : index
    %c0_9 = arith.constant 0 : index
    %10 = vector.load %arg3[%c0_8, %c0_9] : memref<8x32xf32, #tpu.memory_space<vmem>>, vector<8x32xf32>
    %cst_10 = arith.constant dense<0.000000e+00> : vector<8x32xf32>
    %11 = tpu.matmul %9, %10, %cst_10 {dimension_numbers = #tpu.dot_dimension_numbers<[1], [0], [0], [1], [0, 0, 1, 1], [], []>} : vector<8x8xf32>, vector<8x32xf32>, vector<8x32xf32> -> vector<8x32xf32>
    %12 = vector.extract_strided_slice %11 {offsets = [0, 0], sizes = [4, 32], strides = [1, 1]} : vector<8x32xf32> to vector<4x32xf32>
    %13 = vector.extract_strided_slice %11 {offsets = [4, 0], sizes = [4, 32], strides = [1, 1]} : vector<8x32xf32> to vector<4x32xf32>
    %14 = arith.addf %12, %13 : vector<4x32xf32>
    %15 = arith.negf %14 : vector<4x32xf32>
    %16 = math.exp %15 : vector<4x32xf32>
    %cst_11 = arith.constant 1.000000e+00 : f32
    %17 = vector.broadcast %cst_11 : f32 to vector<4x32xf32>
    %18 = arith.addf %17, %16 : vector<4x32xf32>
    %19 = arith.divf %17, %18 : vector<4x32xf32>
    %20 = vector.shape_cast %19 : vector<4x32xf32> to vector<4x32x1xf32>
    %21 = vector.broadcast %20 : vector<4x32x1xf32> to vector<4x32x256xf32>
    %22 = arith.mulf %0, %21 : vector<4x32x256xf32>
    %cst_12 = arith.constant dense<0xFF800000> : vector<4x256xf32>
    %23 = vector.multi_reduction <maximumf>, %22, %cst_12 [1] : vector<4x32x256xf32> to vector<4x256xf32>
    %cst_13 = arith.constant dense<0.000000e+00> : vector<4x256xf32>
    %24 = vector.multi_reduction <add>, %22, %cst_13 [1] : vector<4x32x256xf32> to vector<4x256xf32>
    %cst_14 = arith.constant 3.200000e+01 : f32
    %25 = vector.broadcast %cst_14 : f32 to vector<4x256xf32>
    %26 = arith.divf %24, %25 : vector<4x256xf32>
    tpu.wait_dma2 semaphore(%arg7 : memref<!tpu.dma_semaphore, #tpu.memory_space<semaphore_mem>>) src(%arg4 : memref<2x256x256xbf16, #tpu.memory_space<any>>) dst(%arg6 : memref<2x256x256xbf16, #tpu.memory_space<vmem>>)
    %27 = arith.truncf %23 : vector<4x256xf32> to vector<4x256xbf16>
    %c0_15 = arith.constant 0 : index
    %c0_16 = arith.constant 0 : index
    %c0_17 = arith.constant 0 : index
    %28 = vector.load %arg6[%c0_15, %c0_16, %c0_17] : memref<2x256x256xbf16, #tpu.memory_space<vmem>>, vector<1x256x256xbf16>
    %29 = vector.shape_cast %28 : vector<1x256x256xbf16> to vector<256x256xbf16>
    %cst_18 = arith.constant dense<0.000000e+00> : vector<4x256xf32>
    %30 = tpu.matmul %27, %29, %cst_18 {dimension_numbers = #tpu.dot_dimension_numbers<[1], [0], [0], [1], [0, 0, 1, 1], [], []>} : vector<4x256xbf16>, vector<256x256xbf16>, vector<4x256xf32> -> vector<4x256xf32>
    %31 = arith.truncf %26 : vector<4x256xf32> to vector<4x256xbf16>
    %c1 = arith.constant 1 : index
    %c0_19 = arith.constant 0 : index
    %c0_20 = arith.constant 0 : index
    %32 = vector.load %arg6[%c1, %c0_19, %c0_20] : memref<2x256x256xbf16, #tpu.memory_space<vmem>>, vector<1x256x256xbf16>
    %33 = vector.shape_cast %32 : vector<1x256x256xbf16> to vector<256x256xbf16>
    %cst_21 = arith.constant dense<0.000000e+00> : vector<4x256xf32>
    %34 = tpu.matmul %31, %33, %cst_21 {dimension_numbers = #tpu.dot_dimension_numbers<[1], [0], [0], [1], [0, 0, 1, 1], [], []>} : vector<4x256xbf16>, vector<256x256xbf16>, vector<4x256xf32> -> vector<4x256xf32>
    %35 = arith.addf %30, %34 : vector<4x256xf32>
    %36 = arith.negf %35 : vector<4x256xf32>
    %37 = math.exp %36 : vector<4x256xf32>
    %cst_22 = arith.constant 1.000000e+00 : f32
    %38 = vector.broadcast %cst_22 : f32 to vector<4x256xf32>
    %39 = arith.addf %38, %37 : vector<4x256xf32>
    %40 = arith.divf %38, %39 : vector<4x256xf32>
    %41 = vector.shape_cast %40 : vector<4x256xf32> to vector<4x1x256xf32>
    %42 = vector.broadcast %41 : vector<4x1x256xf32> to vector<4x32x256xf32>
    %43 = arith.mulf %22, %42 : vector<4x32x256xf32>
    %c0_23 = arith.constant 0 : index
    %c0_24 = arith.constant 0 : index
    %c0_25 = arith.constant 0 : index
    %44 = vector.load %arg5[%c0_23, %c0_24, %c0_25] : memref<4x32x256xf32, #tpu.memory_space<vmem>>, vector<4x32x256xf32>
    tpu.vector_store %arg5[%c0_23, %c0_24, %c0_25], %43 {strides = array<i32>} : memref<4x32x256xf32, #tpu.memory_space<vmem>>, vector<4x32x256xf32>,
    return
  }
  func.func @transform_0(%arg0: i32) -> (i32, i32, i32) {
    %c0_i32 = arith.constant 0 : i32
    %c0_i32_0 = arith.constant 0 : i32
    %c0_i32_1 = arith.constant 0 : i32
    return %arg0, %c0_i32, %c0_i32_0 : i32, i32, i32
  }
  func.func @transform_1(%arg0: i32) -> (i32, i32) {
    %c0_i32 = arith.constant 0 : i32
    %c0_i32_0 = arith.constant 0 : i32
    %c0_i32_1 = arith.constant 0 : i32
    return %c0_i32, %c0_i32_0 : i32, i32
  }
  func.func @transform_2(%arg0: i32) -> (i32, i32) {
    %c0_i32 = arith.constant 0 : i32
    %c0_i32_0 = arith.constant 0 : i32
    %c0_i32_1 = arith.constant 0 : i32
    return %c0_i32, %c0_i32_0 : i32, i32
  }
  func.func @transform_4(%arg0: i32) -> (i32, i32, i32) {
    %c0_i32 = arith.constant 0 : i32
    %c0_i32_0 = arith.constant 0 : i32
    %c0_i32_1 = arith.constant 0 : i32
    return %arg0, %c0_i32, %c0_i32_0 : i32, i32, i32
  }
}

</mosaic_0001>

<bundles_post_ra>
// kernel: tpu_custom_call.1
= control target key start
LH: loop header
LB: loop body
LE: loop exit
PB: predicated region body
PF: predicated region fallthrough
CT: control target
= control target key end

     0   :  { %9 = vsyncpa [#allocation5], 0  ;;  %s2520_s0 = inlined_call_operand.hbm [shape: f32[8,32,256], index: 0, kind: input, shape index: {}]   ;;  %s2521_s1 = inlined_call_operand.vmem [shape: f32[32,8], index: 1, kind: input, shape index: {}]   ;;  %s2522_s2 = inlined_call_operand.vmem [shape: f32[8,32], index: 2, kind: input, shape index: {}]   ;;  %s2523_s3 = inlined_call_operand.hbm [shape: bf16[2,256,256], index: 3, kind: input, shape index: {}]   ;;  %s2524_s4 = inlined_call_operand.hbm [shape: f32[8,32,256], index: 4, kind: output, shape index: {}]  }
   0x1   :  { %11 = vsyncpa [#allocation5 + $0x1], 0 }
   0x2   :  { %12 = vsyncpa [#allocation6], 0 }
   0x3   :  { %14 = vsyncpa [#allocation6 + $0x1], 0  ;;  %s1737_s15 = smov 0   ;;  %s1739_s16 = smov 0  }
   0x4   :  { %s1741_s17 = smov 0   ;;  %s1743_s18 = smov 0  }
   0x5 LB: > { %s1758_s19 = sadd.s32 4294967295, %s1693_s18   ;;  %s1463_s20 = sadd.s32 4294967294, %s1693_s18   ;;  %s1693_s18 = sphi %s1743_s18, %s2612_s18   ;;  %s1689_s17 = sphi %s1741_s17, %s2611_s17   ;;  %s1685_s16 = sphi %s1739_s16, %s2610_s16   ;;  %s1681_s15 = sphi %s1737_s15, %s2609_s15  }
   0x6   : > { %s1762_s21 = sadd.s32 1, %s1693_s18   ;;  %s27_s22 = sadd.s32 1, %s1689_s17 }
   0x7   : > { %s24_s23 = ssub.s32 %s1693_s18, %s1762_s21  ;;  %p34_p0 = scmp.ne.s32.totalorder %s1689_s17, %s1685_s16 }
   0x8   : > { %p25_p1 = scmp.eq.s32.totalorder %s24_s23, 0  ;;  %p35_p2 = scmp.eq.s32.totalorder %s1693_s18, 0 }
   0x9   : > { %p40_p3 = scmp.ne.s32.totalorder %s1685_s16, %s1681_s15  ;;  %p41_p4 = scmp.eq.s32.totalorder %s1758_s19, 0 }
   0xa   : > { %s1774_s24 = scalar_select %p25_p1, %s1689_s17, %s27_s22  }
   0xb   : > { %p1776_p5 = por %p35_p2, %p34_p0  ;;  %p1780_p6 = por %p41_p4, %p40_p3 }
   0xc   : > { %p106_p7 = scmp.eq.s32.totalorder %s1758_s19, 1  ;;  %p112_p8 = scmp.eq.s32.totalorder %s1463_s20, 1 }
   0xd   : > { %p1534_p10 = scmp.lt.s32.totalorder %s1693_s18, 2  ;;  %s138_s29 = sand.u32 1, %s1689_s17  }
   0xe   : > { %p1787_p11 = por %p106_p7, %p34_p0  ;;  %p1791_p12 = por %p112_p8, %p40_p3 }
   0xf   : > { %s1488_s30 = sshll.u32 %s1693_s18, 12  ;;  %s1466_s5 = sshll.u32 %s138_s29, 8 }
  0x10   : > { %s2553_s27 = scalar_select %p1787_p11, 1, 0 }
  0x11   : > { %s2554_s28 = scalar_select %p1791_p12, 1, 0 }
  0x12   : > { %s1800_s8 = scalar_lea.hbm %s2520_s0, %s1488_s30  ;;  %s142_s9 = scalar_lea.vmem [#allocation4], %s1466_s5 }
  0x13   : > { %s150_s10 = sshll.u32 %s142_s9, 4  ;;  %p1804_p13 = pnand %p1534_p10, %p1776_p5  ;;  %s1808_s10 = int_to_ptr.vmem [resolvable:$true] %s150_s10 }
  0x14   : > { %s1810_s12 = scalar_lea.sflag [#allocation5], %s138_s29  ;;  %s1595_s13 = scalar_lea.hbm %s1800_s8, 4096 }
  0x15   : > { %p1596_p0 = scmp.ne.s32.totalorder %s1800_s8, %s1595_s13  ;;  %p1597_p1 = pneg %p1804_p13 }
  0x16   : > { %s1600_s22 = scalar_lea.hbm %s2520_s0, 8192  ;;  %p1601_p4 = scmp.lt.u32.totalorder %s1800_s8, %s2520_s0 }
  0x17   : > { %p1598_p2 = pnand %p1597_p1, %p1596_p0  ;;  %p1602_p5 = scmp.lt.u32.totalorder %s1600_s22, %s1595_s13 }
  0x18   : > { %p1604_p8 = scmp.lt.u32.totalorder %s1595_s13, %s1800_s8 }
  0x19   : > { %p1599_p3 = pneg %p1598_p2  ;;  %p1603_p7 = por %p1602_p5, %p1601_p4 }
  0x1b   : > { %p1605_p10 = por %p1604_p8, %p1603_p7 }
  0x1d   : > { %p1606_p9 = pnand %p1605_p10, %p1599_p3 }
  0x1f   : > { %1609 = shalt.err (!%p1606_p9)
}
  0x20   : > { %s1610_s29 = scalar_lea.vmem %s1808_s10, 4096  ;;  %s1695_s30 = smov [#allocation4]  }
  0x21   : > { %p1611_p0 = scmp.ne.s32.totalorder %s1808_s10, %s1610_s29  ;;  %s1615_s5 = sshll.u32 %s1695_s30, 4  ;;  %s1616_s5 = int_to_ptr.vmem [resolvable:$false] %s1615_s5 }
  0x22   : > { %s1617_s6 = scalar_lea.vmem %s1616_s5, 8192  ;;  %p1618_p11 = scmp.lt.s32.totalorder %s1808_s10, %s1616_s5 }
  0x23   : > { %p1613_p2 = pnand %p1611_p0, %p1597_p1  ;;  %p1619_p4 = scmp.lt.s32.totalorder %s1617_s6, %s1610_s29 }
  0x25   : > { %p1614_p12 = pneg %p1613_p2  ;;  %p1620_p5 = por %p1619_p4, %p1618_p11 }
  0x27   : > { %p1621_p7 = pnand %p1620_p5, %p1614_p12 }
  0x29   : > { %1624 = shalt.err (!%p1621_p7)
}
  0x2a   : > { %s1696_s7 = smov 256   ;;  %s1697_s9 = smov 16  }
  0x2b   : > { %1529 = dma.hbm_to_vmem [thread:$0]  (!%p1804_p13), %s1800_s8, 4096, %s1808_s10, %s1810_s12, %s1696_s7, %s1696_s7, %s1697_s9  }
  0x2c   : > { %p1470_p9 = scmp.ge.s32.totalorder %s1693_s18, 1  ;;  %p158_p1 = scmp.lt.s32.totalorder %s1693_s18, 3 }
  0x2e   : > { %p159_p3 = pnand %p1470_p9, %p158_p1 }
  0x30   : > { %162 = sbr.rel (%p159_p3) target bundleno = 1266 (0x4f2), region = 32 }
  0x37   : > { %s1841_s13 = sand.u32 1, %s1685_s16  }
  0x38   : > { %s1471_s14 = sshll.u32 %s1841_s13, 8  ;;  %s165_s20 = scalar_lea.sflag [#allocation5], %s1841_s13 }
  0x39   : > { %s1847_s22 = scalar_lea.vmem [#allocation4], %s1471_s14 }
  0x3a   : > { %1670 = dma.done.wait (%p1780_p6), %s165_s20, 4096  }
  0x3b   : > { %1672 = vsyncadd (%p1780_p6), %s165_s20, 4294963200  ;;  %s197_s8 = sld [smem:[#allocation0]]   ;;  %s1698_s10 = smov 256   ;;  %vm1707_vm0 = vmmov 0   ;;  %vm400_vm1 = vcmask 130112   ;;  %vm407_vm2 = vcmask 195712  }
  0x3c   : > { %209 = sst [smem:[#allocation9]] %s1698_s10  ;;  %s1699_s11 = smov 2   ;;  %vm414_vm3 = vcmask 261312   ;;  %vm572_vm4 = vcmask 1045509   ;;  %vm473_vm5 = vcmask 1041409   ;;  %vm475_vm6 = vcmask 1042434  }
  0x3d   : > { %211 = sst [smem:[#allocation9 + $0x1]] %s1698_s10  ;;  %s1700_s12 = smov 64   ;;  %vm574_vm7 = vcmask 1046534   ;;  %vm576_vm8 = vcmask 1047559   ;;  %vm477_vm9 = vcmask 1043459   ;;  %vm579_vm10 = vcmask 1043456  }
  0x3e   : > { %213 = sst [smem:[#allocation9 + $0x2]] %s1699_s11  ;;  %s1701_s23 = smov 128   ;;  %vm585_vm11 = vcmask 261120   ;;  %vm661_vm12 = vcmask 64512  }
  0x3f   : > { %215 = sst [smem:[#allocation9 + $0x3]] %s1700_s12  ;;  %s1702_s29 = smov 4  }
  0x40   : > { %217 = sst [smem:[#allocation9 + $0x4]] %s1701_s23  ;;  %s1703_s30 = smov [#allocation2]  }
  0x41   : > { %219 = sst [smem:[#allocation9 + $0x5]] %s1699_s11  ;;  %s1473_s25 = sshll.u32 %s197_s8, 26 }
  0x42   : > { %221 = sst [smem:[#allocation9 + $0x6]] %s1701_s23  ;;  %s1474_s26 = sadd.s32 134217728, %s1473_s25 }
  0x43   : > { %223 = sst [smem:[#allocation9 + $0x7]] %s1700_s12  ;;  %s205_s5 = sshll.u32 %s1703_s30, 4  ;;  %s206_s5 = int_to_ptr.vmem [resolvable:$true] %s205_s5 }
  0x44   : > { %225 = sst [smem:[#allocation9 + $0x8]] %s1702_s29  ;;  %s1704_s6 = smov [#allocation3]  }
  0x45   : > { %s1705_s7 = smov [#allocation8]  }
  0x46   : > { %227 = dma.general %s2523_s3, 8192, %s206_s5, %s1704_s6, %s1705_s7, [#allocation9], %s1474_s26, 0  }
  0x47   : > { %v1859_v0 = vld [vmem:[%s1847_s22 + $0x40] sm:$0xff]  ;;  %v1862_v1 = vld [vmem:[%s1847_s22 + $0x48] sm:$0xff]  ;;  %v1873_v5 = vld [vmem:[%s1847_s22 + $0x50] sm:$0xff]  ;;  %s2356_s6 = scalar_lea.vmem [#allocation7], %s1471_s14 }
  0x48   : > { %v1865_v2 = vld [vmem:[%s1847_s22] sm:$0xff]  ;;  %v320_v3 = vadd.f32 %v1862_v1, %v1859_v0  ;;  %v1870_v4 = vld [vmem:[%s1847_s22 + $0x8] sm:$0xff]  ;;  %v1876_v6 = vld [vmem:[%s1847_s22 + $0x58] sm:$0xff]  ;;  %v272_v27 = vmax.f32 %v1859_v0, %v1862_v1 }
  0x49   : > { %v308_v7 = vadd.f32 %v1870_v4, %v1865_v2  ;;  %v1881_v8 = vld [vmem:[%s1847_s22 + $0x10] sm:$0xff]  ;;  %v1884_v9 = vld [vmem:[%s1847_s22 + $0x18] sm:$0xff]  ;;  %v323_v10 = vadd.f32 %v1876_v6, %v1873_v5  ;;  %v1891_v12 = vld [vmem:[%s1847_s22 + $0x60] sm:$0xff]  ;;  %v260_v25 = vmax.f32 %v1865_v2, %v1870_v4  ;;  %v275_v26 = vmax.f32 %v1873_v5, %v1876_v6 }
  0x4a   : > { %321 = vadd.xlane.f32.xlu1 %v320_v3  ;;  %v311_v11 = vadd.f32 %v1884_v9, %v1881_v8  ;;  %v1894_v13 = vld [vmem:[%s1847_s22 + $0x68] sm:$0xff]  ;;  %v1897_v14 = vld [vmem:[%s1847_s22 + $0x20] sm:$0xff]  ;;  %v1907_v18 = vld [vmem:[%s1847_s22 + $0x90] sm:$0xff]  ;;  %v263_v24 = vmax.f32 %v1881_v8, %v1884_v9 }
  0x4b   : > { %309 = vadd.xlane.f32.xlu0 %v308_v7  ;;  %2556 = vst [vmem:[#allocation13_spill] sm:$0xff] %v1894_v13  ;;  %v1900_v15 = vld [vmem:[%s1847_s22 + $0x28] sm:$0xff]  ;;  %v326_v16 = vadd.f32 %v1894_v13, %v1891_v12  ;;  %v1910_v19 = vld [vmem:[%s1847_s22 + $0x98] sm:$0xff]  ;;  %v1913_v20 = vld [vmem:[%s1847_s22 + $0x80] sm:$0xff]  ;;  %v278_v45 = vmax.f32 %v1891_v12, %v1894_v13 }
  0x4c   : > { %v314_v17 = vadd.f32 %v1900_v15, %v1897_v14  ;;  %v1916_v21 = vld [vmem:[%s1847_s22 + $0x88] sm:$0xff]  ;;  %v335_v22 = vadd.f32 %v1910_v19, %v1907_v18  ;;  %v1931_v28 = vld [vmem:[%s1847_s22 + $0x70] sm:$0xff]  ;;  %v1934_v29 = vld [vmem:[%s1847_s22 + $0x78] sm:$0xff]  ;;  %v266_v42 = vmax.f32 %v1897_v14, %v1900_v15  ;;  %v287_v49 = vmax.f32 %v1907_v18, %v1910_v19 }
  0x4d   : > { %v332_v23 = vadd.f32 %v1916_v21, %v1913_v20  ;;  %2557 = vst [vmem:[#allocation14_spill] sm:$0xff] %v1931_v28  ;;  %2558 = vst [vmem:[#allocation15_spill] sm:$0xff] %v1934_v29  ;;  %v1937_v30 = vld [vmem:[%s1847_s22 + $0x30] sm:$0xff]  ;;  %v1940_v31 = vld [vmem:[%s1847_s22 + $0x38] sm:$0xff]  ;;  %v329_v32 = vadd.f32 %v1934_v29, %v1931_v28  ;;  %v284_v44 = vmax.f32 %v1913_v20, %v1916_v21 }
  0x4e   : > { %324 = vadd.xlane.f32.xlu1 %v323_v10  ;;  %2559 = vst [vmem:[#allocation16_spill] sm:$0xff] %v1937_v30  ;;  %2560 = vst [vmem:[#allocation17_spill] sm:$0xff] %v1940_v31  ;;  %v317_v33 = vadd.f32 %v1940_v31, %v1937_v30  ;;  %v1947_v34 = vld [vmem:[%s1847_s22 + $0xc0] sm:$0xff]  ;;  %v1950_v35 = vld [vmem:[%s1847_s22 + $0xc8] sm:$0xff]  ;;  %v269_v52 = vmax.f32 %v1937_v30, %v1940_v31  ;;  %v281_v55 = vmax.f32 %v1931_v28, %v1934_v29 }
  0x4f   : > { %312 = vadd.xlane.f32.xlu0 %v311_v11  ;;  %v1953_v36 = vld [vmem:[%s1847_s22 + $0xa0] sm:$0xff]  ;;  %v1956_v37 = vld [vmem:[%s1847_s22 + $0xa8] sm:$0xff]  ;;  %v344_v38 = vadd.f32 %v1950_v35, %v1947_v34  ;;  %v1963_v40 = vld [vmem:[%s1847_s22 + $0xd0] sm:$0xff]  ;;  %v296_v57 = vmax.f32 %v1947_v34, %v1950_v35  ;;  %v1706_v11 = vmov 0.0|0.0  }
  0x50   : > { %v338_v39 = vadd.f32 %v1956_v37, %v1953_v36  ;;  %v1966_v41 = vld [vmem:[%s1847_s22 + $0xd8] sm:$0xff]  ;;  %v1977_v46 = vld [vmem:[%s1847_s22 + $0xb0] sm:$0xff]  ;;  %v1987_v50 = vld [vmem:[%s1847_s22 + $0xe0] sm:$0xff]  ;;  %v290_v54 = vmax.f32 %v1953_v36, %v1956_v37  ;;  %1514 = vmatprep.subr.bf16.mxu0 %v1706_v11 }
  0x51   : > { %v347_v43 = vadd.f32 %v1966_v41, %v1963_v40  ;;  %2561 = vst [vmem:[#allocation18_spill] sm:$0xff] %v1977_v46  ;;  %v1980_v47 = vld [vmem:[%s1847_s22 + $0xb8] sm:$0xff]  ;;  %2563 = vst [vmem:[#allocation20_spill] sm:$0xff] %v1987_v50  ;;  %v1990_v51 = vld [vmem:[%s1847_s22 + $0xe8] sm:$0xff]  ;;  %v299_v56 = vmax.f32 %v1963_v40, %v1966_v41 }
  0x52   : > { %327 = vadd.xlane.f32.xlu1 %v326_v16  ;;  %2562 = vst [vmem:[#allocation19_spill] sm:$0xff] %v1980_v47  ;;  %v341_v48 = vadd.f32 %v1980_v47, %v1977_v46  ;;  %2564 = vst [vmem:[#allocation21_spill] sm:$0xff] %v1990_v51  ;;  %v350_v53 = vadd.f32 %v1990_v51, %v1987_v50  ;;  %v2005_v58 = vld [vmem:[%s1847_s22 + $0xf0] sm:$0xff]  ;;  %v2008_v59 = vld [vmem:[%s1847_s22 + $0xf8] sm:$0xff]  ;;  %v293_v60 = vmax.f32 %v1977_v46, %v1980_v47 }
  0x53   : > { %315 = vadd.xlane.f32.xlu0 %v314_v17  ;;  %2565 = vst [vmem:[#allocation22_spill] sm:$0xff] %v2005_v58  ;;  %2566 = vst [vmem:[#allocation23_spill] sm:$0xff] %v2008_v59  ;;  %v353_v61 = vadd.f32 %v2008_v59, %v2005_v58  ;;  %v305_v62 = vmax.f32 %v2005_v58, %v2008_v59  ;;  %v302_v63 = vmax.f32 %v1987_v50, %v1990_v51  ;;  %v581_v3 = vld [vmem:[%s2521_s1] sm:$0xff]  ;;  %v582_v7 = vld [vmem:[%s2521_s1 + $0x8] sm:$0xff] }
  0x54   : > { %v1515_v10 = vpack.c.bf16 %v582_v7, %v581_v3  ;;  %v583_v16 = vld [vmem:[%s2521_s1 + $0x10] sm:$0xff]  ;;  %v584_v17 = vld [vmem:[%s2521_s1 + $0x18] sm:$0xff] }
  0x56   : > { %336 = vadd.xlane.f32.xlu1 %v335_v22  ;;  %1516 = vmatpush3.bf16.msra.mxu0 %v1515_v10  ;;  %v1518_v22 = vpack.c.bf16 %v584_v17, %v583_v16 }
  0x57   : > { %333 = vadd.xlane.f32.xlu0 %v332_v23  ;;  %1517 = vmatprep.subr.bf16.mxu0 %v1706_v11  ;;  %v1708_v23 = vmov 0.0  }
  0x58   : > { %1506 = vmatprep.mubr.msk.f32.mxu0 %vm1707_vm0, %v1708_v23  ;;  %1509 = vmatprep.subr.mxu1 %v1708_v23 }
  0x59   : > { %1511 = vmatprep.mubr.msk.f32.mxu1 %vm1707_vm0, %v1708_v23 }
  0x5a   : > { %264 = vmax.xlane.f32.xlu1 %v263_v24  ;;  %1519 = vmatpush3.bf16.msra.mxu0 %v1518_v22 }
  0x5b   : > { %261 = vmax.xlane.f32.xlu0 %v260_v25 }
  0x5e   : > { %276 = vmax.xlane.f32.xlu1 %v275_v26 }
  0x5f   : > { %273 = vmax.xlane.f32.xlu0 %v272_v27 }
  0x62   : > { %330 = vadd.xlane.f32.xlu1 %v329_v32 }
  0x63   : > { %318 = vadd.xlane.f32.xlu0 %v317_v33 }
  0x66   : > { %345 = vadd.xlane.f32.xlu1 %v344_v38 }
  0x67   : > { %339 = vadd.xlane.f32.xlu0 %v338_v39 }
  0x6a   : > { %267 = vmax.xlane.f32.xlu1 %v266_v42 }
  0x6b   : > { %348 = vadd.xlane.f32.xlu0 %v347_v43 }
  0x6e   : > { %285 = vmax.xlane.f32.xlu1 %v284_v44 }
  0x6f   : > { %279 = vmax.xlane.f32.xlu0 %v278_v45 }
  0x72   : > { %342 = vadd.xlane.f32.xlu1 %v341_v48 }
  0x73   : > { %288 = vmax.xlane.f32.xlu0 %v287_v49 }
  0x76   : > { %270 = vmax.xlane.f32.xlu1 %v269_v52 }
  0x77   : > { %351 = vadd.xlane.f32.xlu0 %v350_v53 }
  0x7a   : > { %291 = vmax.xlane.f32.xlu1 %v290_v54 }
  0x7b   : > { %282 = vmax.xlane.f32.xlu0 %v281_v55  ;;  %v389_v55 = vlaneseq }
  0x7e   : > { %300 = vmax.xlane.f32.xlu1 %v299_v56 }
  0x7f   : > { %297 = vmax.xlane.f32.xlu0 %v296_v57 }
  0x82   : > { %294 = vmax.xlane.f32.xlu1 %v293_v60  ;;  %v390_v60 = vand.u32 127, %v389_v55 }
  0x83   : > { %354 = vadd.xlane.f32.xlu0 %v353_v61 }
  0x84   : > { %v402_v3 = vadd.s32 4294967280, %v390_v60  ;;  %v409_v17 = vadd.s32 4294967272, %v390_v60 }
  0x86   : > { %306 = vmax.xlane.f32.xlu1 %v305_v62  ;;  %v2044_v62 = vshrl.u32 %v389_v55, 7 }
  0x87   : > { %303 = vmax.xlane.f32.xlu0 %v302_v63  ;;  %v395_v63 = vadd.s32 4294967288, %v390_v60 }
  0x88   : > { %v2049_v11 = vsub.s32 %v390_v60, %v2044_v62  ;;  %v2055_v58 = vsub.s32 %v402_v3, %v2044_v62  ;;  %v2060_v31 = vsub.s32 %v409_v17, %v2044_v62 }
  0x89   : > { %v2052_v16 = vsub.s32 %v395_v63, %v2044_v62 }
  0xd7   : > { %v322_v24 = vpop.xlane.xlu1 %321 }
  0xd8   : > { %v310_v25 = vpop.xlane.xlu0 %309  ;;  %v361_v22 = vmul.f32 0.00390625, %v322_v24 }
  0xd9   : > { %v357_v29 = vmul.f32 0.00390625, %v310_v25 }
  0xda   : > { %v518_v24 = vrot.slane %v361_v22, %v2049_v11 }
  0xdb   : > { %v325_v26 = vpop.xlane.xlu1 %324  ;;  %v499_v25 = vrot.slane %v357_v29, %v2049_v11 }
  0xdc   : > { %v313_v27 = vpop.xlane.xlu0 %312  ;;  %v362_v23 = vmul.f32 0.00390625, %v325_v26 }
  0xdd   : > { %v358_v59 = vmul.f32 0.00390625, %v313_v27 }
  0xde   : > { %v522_v26 = vrot.slane %v362_v23, %v2052_v16 }
  0xdf   : > { %v328_v32 = vpop.xlane.xlu1 %327  ;;  %v503_v27 = vrot.slane %v358_v59, %v2052_v16 }
  0xe0   : > { %v316_v33 = vpop.xlane.xlu0 %315  ;;  %v363_v28 = vmul.f32 0.00390625, %v328_v32  ;;  %v523_v22 = vsel %vm400_vm1, %v522_v26, %v518_v24 }
  0xe1   : > { %v359_v47 = vmul.f32 0.00390625, %v316_v33 }
  0xe2   : > { %v527_v32 = vrot.slane %v363_v28, %v2055_v58 }
  0xe3   : > { %v337_v38 = vpop.xlane.xlu1 %336  ;;  %v508_v33 = vrot.slane %v359_v47, %v2055_v58 }
  0xe4   : > { %v334_v39 = vpop.xlane.xlu0 %333  ;;  %v366_v46 = vmul.f32 0.00390625, %v337_v38 }
  0xe5   : > { %v365_v50 = vmul.f32 0.00390625, %v334_v39 }
  0xe6   : > { %v541_v38 = vrot.slane %v366_v46, %v2052_v16 }
  0xe7   : > { %v2030_v42 = vpop.xlane.xlu1 %264 }
  0xe8   : > { %v2032_v43 = vpop.xlane.xlu0 %261 }
  0xe9   : > { %v394_v17 = vrot.slane %v2032_v43, %v2049_v11  ;;  %v528_v43 = vsel %vm407_vm2, %v527_v32, %v523_v22 }
  0xeb   : > { %v2034_v44 = vpop.xlane.xlu1 %276 }
  0xec   : > { %v2036_v45 = vpop.xlane.xlu0 %273  ;;  %v423_v59 = vrot.slane %v2034_v44, %v2052_v16 }
  0xed   : > { %v419_v29 = vrot.slane %v2036_v45, %v2049_v11 }
  0xef   : > { %v331_v48 = vpop.xlane.xlu1 %330  ;;  %v424_v24 = vsel %vm400_vm1, %v423_v59, %v419_v29 }
  0xf0   : > { %v319_v49 = vpop.xlane.xlu0 %318  ;;  %v364_v63 = vmul.f32 0.00390625, %v331_v48  ;;  %v537_v48 = vrot.slane %v365_v50, %v2049_v11  ;;  %v504_v50 = vsel %vm400_vm1, %v503_v27, %v499_v25 }
  0xf1   : > { %v360_v60 = vmul.f32 0.00390625, %v319_v49  ;;  %v399_v49 = vrot.slane %v2030_v42, %v2052_v16  ;;  %v509_v30 = vsel %vm407_vm2, %v508_v33, %v504_v50 }
  0xf2   : > { %v532_v28 = vrot.slane %v364_v63, %v2060_v31  ;;  %v542_v63 = vsel %vm400_vm1, %v541_v38, %v537_v48 }
  0xf3   : > { %v346_v52 = vpop.xlane.xlu1 %345  ;;  %v513_v47 = vrot.slane %v360_v60, %v2060_v31  ;;  %v401_v60 = vsel %vm400_vm1, %v399_v49, %v394_v17 }
  0xf4   : > { %v340_v53 = vpop.xlane.xlu0 %339  ;;  %v369_v42 = vmul.f32 0.00390625, %v346_v52  ;;  %v533_v52 = vsel %vm414_vm3, %v532_v28, %v528_v43 }
  0xf5   : > { %v367_v46 = vmul.f32 0.00390625, %v340_v53  ;;  %v514_v26 = vsel %vm414_vm3, %v513_v47, %v509_v30 }
  0xf7   : > { %v2038_v54 = vpop.xlane.xlu1 %267  ;;  %v546_v27 = vrot.slane %v367_v46, %v2055_v58 }
  0xf8   : > { %v349_v56 = vpop.xlane.xlu0 %348  ;;  %v406_v25 = vrot.slane %v2038_v54, %v2055_v58 }
  0xf9   : > { %v370_v44 = vmul.f32 0.00390625, %v349_v56  ;;  %v556_v56 = vrot.slane %v369_v42, %v2049_v11 }
  0xfb   : > { %v2040_v57 = vpop.xlane.xlu1 %285  ;;  %v560_v33 = vrot.slane %v370_v44, %v2052_v16 }
  0xfc   : > { %v2042_v61 = vpop.xlane.xlu0 %279  ;;  %v438_v30 = vrot.slane %v2040_v57, %v2049_v11 }
  0xfd   : > { %v561_v22 = vsel %vm400_vm1, %v560_v33, %v556_v56 }
  0xff   : > { %v343_v7 = vpop.xlane.xlu1 %342 }
 0x100   : > { %v2046_v10 = vpop.xlane.xlu0 %288  ;;  %v368_v53 = vmul.f32 0.00390625, %v343_v7  ;;  %v428_v7 = vrot.slane %v2042_v61, %v2055_v58 }
 0x102   : > { %v551_v17 = vrot.slane %v368_v53, %v2060_v31  ;;  %v573_v53 = vsel %vm572_vm4, %v533_v52, %v514_v26  ;;  %v660_v52 = vld [vmem:[%s2522_s2] sm:$0xff] }
 0x103   : > { %v2057_v55 = vpop.xlane.xlu1 %270  ;;  %1510 = vmatpush3.msra.mxu1 %v660_v52 }
 0x104   : > { %v352_v51 = vpop.xlane.xlu0 %351  ;;  %v413_v29 = vrot.slane %v2057_v55, %v2060_v31 }
 0x105   : > { %v371_v13 = vmul.f32 0.00390625, %v352_v51  ;;  %v442_v51 = vrot.slane %v2046_v10, %v2052_v16  ;;  %v547_v10 = vsel %vm407_vm2, %v546_v27, %v542_v63 }
 0x107   : > { %v292_v3 = vpop.xlane.xlu1 %291  ;;  %v565_v54 = vrot.slane %v371_v13, %v2055_v58  ;;  %v443_v47 = vsel %vm400_vm1, %v442_v51, %v438_v30 }
 0x108   : > { %v283_v39 = vpop.xlane.xlu0 %282  ;;  %v447_v38 = vrot.slane %v292_v3, %v2055_v58  ;;  %v408_v3 = vsel %vm407_vm2, %v406_v25, %v401_v60 }
 0x109   : > { %v433_v48 = vrot.slane %v283_v39, %v2060_v31  ;;  %v429_v39 = vsel %vm407_vm2, %v428_v7, %v424_v24 }
 0x10a   : > { %v448_v50 = vsel %vm407_vm2, %v447_v38, %v443_v47  ;;  %v804_v47 = vsub.s32 3, %v2044_v62 }
 0x10b   : > { %v301_v23 = vpop.xlane.xlu1 %300  ;;  %v434_v42 = vsel %vm414_vm3, %v433_v48, %v429_v39 }
 0x10c   : > { %v298_v45 = vpop.xlane.xlu0 %297  ;;  %v461_v28 = vrot.slane %v301_v23, %v2052_v16  ;;  %v566_v23 = vsel %vm407_vm2, %v565_v54, %v561_v22 }
 0x10d   : > { %v457_v57 = vrot.slane %v298_v45, %v2049_v11  ;;  %v552_v11 = vsel %vm414_vm3, %v551_v17, %v547_v10  ;;  %v415_v45 = vsel %vm414_vm3, %v413_v29, %v408_v3 }
 0x10e   : > { %v474_v24 = vsel %vm473_vm5, %v434_v42, %v415_v45 }
 0x10f   : > { %v295_v32 = vpop.xlane.xlu1 %294  ;;  %v462_v63 = vsel %vm400_vm1, %v461_v28, %v457_v57  ;;  %v2141_v28 = vsub.s32 1, %v2044_v62  ;;  %v785_v57 = vsub.s32 2, %v2044_v62 }
 0x110   : > { %v355_v49 = vpop.xlane.xlu0 %354  ;;  %v452_v61 = vrot.slane %v295_v32, %v2060_v31 }
 0x111   : > { %v372_v59 = vmul.f32 0.00390625, %v355_v49 }
 0x112   : > { %v453_v43 = vsel %vm414_vm3, %v452_v61, %v448_v50 }
 0x113   : > { %v570_v13 = vrot.slane %v372_v59, %v2060_v31  ;;  %v307_v46 = vpop.xlane.xlu1 %306  ;;  %v476_v27 = vsel %vm475_vm6, %v453_v43, %v474_v24  ;;  %v2137_v59 = vsub.s32 0, %v2044_v62 }
 0x114   : > { %v304_v55 = vpop.xlane.xlu0 %303  ;;  %v471_v16 = vrot.slane %v307_v46, %v2060_v31 }
 0x115   : > { %v466_v44 = vrot.slane %v304_v55, %v2055_v58  ;;  %v571_v60 = vsel %vm414_vm3, %v570_v13, %v566_v23  ;;  %v575_v58 = vsel %vm574_vm7, %v552_v11, %v573_v53 }
 0x116   : > { %v577_v7 = vsel %vm576_vm8, %v571_v60, %v575_v58 }
 0x117   : > { %v467_v31 = vsel %vm407_vm2, %v466_v44, %v462_v63 }
 0x118   : > { %v472_v56 = vsel %vm414_vm3, %v471_v16, %v467_v31 }
 0x119   : > { %v478_v25 = vsel %vm477_vm9, %v472_v56, %v476_v27 }
 0x11a   : > { %v580_v51 = vsel %vm579_vm10, %v478_v25, %v577_v7 }
 0x11b   : > { %1507 = vmatmul.mubr.msk.f32.vlgmr.msra.gmra.mrb[0].mxu0 %vm585_vm11, %v580_v51 }
 0x1ee   : > { %v655_v26 = vpop.f32.mrb[0].mxu0 }
 0x1ef   : > { %v659_v32 = vmax.f32 %v655_v26, 0.0  ;;  %v1508_v33 = vpop.f32.mrb[1].mxu0 }
 0x1f1   : > { %1512 = vmatmul.mubr.msk.f32.vlgmr.msra.gmra.mrb[0].mxu1 %vm661_vm12, %v659_v32 }
 0x2c4   : > { %v731_v30 = vpop.f32.mrb[0].mxu1 }
 0x2c5   : > { %v736_v38 = vrot.slane %v731_v30, 4  ;;  %v1513_v48 = vpop.f32.mrb[1].mxu1 }
 0x2c7   : > { %v738_v49 = vadd.f32 %v736_v38, %v731_v30 }
 0x2c9   : > { %v1477_v17 = vmul.f32 -1.442695, %v738_v49 }
 0x2cb   : > { %1583 = vpow2.f32 %v1477_v17 }
 0x2d5   : > { %v1584_v54 = vpop.eup %1583 }
 0x2d6   : > { %v742_v61 = vadd.f32 1.0, %v1584_v54 }
 0x2d8   : > { %1585 = vrcp.f32 %v742_v61 }
 0x2e2   : > { %v1586_v10 = vpop.eup %1585 }
 0x2e3   : > { %v748_v29 = vrot.slane %v1586_v10, %v2137_v59  ;;  %v767_v3 = vrot.slane %v1586_v10, %v2141_v28  ;;  %v786_v39 = vrot.slane %v1586_v10, %v785_v57  ;;  %v805_v13 = vrot.slane %v1586_v10, %v804_v47  ;;  %v2575_v10 = vld [vmem:[#allocation13_spill] sm:$0xff]  ;;  %v2576_v57 = vld [vmem:[#allocation16_spill] sm:$0xff] }
 0x2e5   : > { %754 = vbcast.lane.b32.xlu1 %v748_v29, 264  ;;  %750 = vbcast.lane.b32.xlu0 %v748_v29, 256 }
 0x2e9   : > { %769 = vbcast.lane.b32.xlu1 %v767_v3, 256  ;;  %788 = vbcast.lane.b32.xlu0 %v786_v39, 256 }
 0x2ed   : > { %773 = vbcast.lane.b32.xlu1 %v767_v3, 264  ;;  %807 = vbcast.lane.b32.xlu0 %v805_v13, 256 }
 0x2f1   : > { %792 = vbcast.lane.b32.xlu1 %v786_v39, 264  ;;  %758 = vbcast.lane.b32.xlu0 %v748_v29, 272 }
 0x2f5   : > { %811 = vbcast.lane.b32.xlu1 %v805_v13, 264  ;;  %796 = vbcast.lane.b32.xlu0 %v786_v39, 272 }
 0x2f9   : > { %777 = vbcast.lane.b32.xlu1 %v767_v3, 272  ;;  %762 = vbcast.lane.b32.xlu0 %v748_v29, 280 }
 0x2fd   : > { %815 = vbcast.lane.b32.xlu1 %v805_v13, 272  ;;  %800 = vbcast.lane.b32.xlu0 %v786_v39, 280  ;;  %v2577_v39 = vld [vmem:[#allocation17_spill] sm:$0xff] }
 0x301   : > { %781 = vbcast.lane.b32.xlu1 %v767_v3, 280 }
 0x305   : > { %819 = vbcast.lane.b32.xlu1 %v805_v13, 280 }
 0x357   : > { %v755_v46 = vpop.permute.xlu1 %754  ;;  %v751_v22 = vpop.permute.xlu0 %750 }
 0x358   : > { %v2147_v55 = vmul.f32 %v755_v46, %v1881_v8  ;;  %v2150_v16 = vmul.f32 %v755_v46, %v1884_v9  ;;  %v2153_v11 = vmul.f32 %v751_v22, %v1865_v2  ;;  %v2156_v23 = vmul.f32 %v751_v22, %v1870_v4 }
 0x35a   : > { %v853_v45 = vmax.f32 %v2153_v11, %v2147_v55  ;;  %v862_v63 = vmax.f32 %v2156_v23, %v2150_v16  ;;  %v925_v4 = vadd.f32 %v2147_v55, %v2153_v11  ;;  %v934_v53 = vadd.f32 %v2150_v16, %v2156_v23 }
 0x35b   : > { %v770_v50 = vpop.permute.xlu1 %769  ;;  %v789_v42 = vpop.permute.xlu0 %788 }
 0x35c   : > { %v2185_v27 = vmul.f32 %v789_v42, %v1913_v20  ;;  %v2188_v56 = vmul.f32 %v789_v42, %v1916_v21 }
 0x35f   : > { %v774_v43 = vpop.permute.xlu1 %773  ;;  %v808_v44 = vpop.permute.xlu0 %807 }
 0x360   : > { %v2163_v8 = vmul.f32 %v774_v43, %v1873_v5  ;;  %v2166_v9 = vmul.f32 %v774_v43, %v1876_v6  ;;  %v2179_v5 = vmul.f32 %v770_v50, %v1859_v0  ;;  %v2182_v6 = vmul.f32 %v770_v50, %v1862_v1 }
 0x361   : > { %v2191_v58 = vmul.f32 %v808_v44, %v1947_v34 }
 0x362   : > { %v871_v1 = vmax.f32 %v2179_v5, %v2163_v8  ;;  %v880_v20 = vmax.f32 %v2182_v6, %v2166_v9  ;;  %v943_v21 = vadd.f32 %v2163_v8, %v2179_v5  ;;  %v952_v34 = vadd.f32 %v2166_v9, %v2182_v6 }
 0x363   : > { %v793_v60 = vpop.permute.xlu1 %792  ;;  %v759_v2 = vpop.permute.xlu0 %758  ;;  %2569 = vst [vmem:[#allocation26_spill] sm:$0xff] %v2191_v58 }
 0x364   : > { %v2173_v24 = vmul.f32 %v793_v60, %v1907_v18  ;;  %v2176_v31 = vmul.f32 %v793_v60, %v1910_v19  ;;  %v2194_v18 = vmul.f32 %v808_v44, %v1950_v35  ;;  %v2197_v19 = vmul.f32 %v759_v2, %v1897_v14 }
 0x365   : > { %v2200_v0 = vmul.f32 %v759_v2, %v1900_v15 }
 0x366   : > { %2567 = vst [vmem:[#allocation24_spill] sm:$0xff] %v2173_v24  ;;  %2568 = vst [vmem:[#allocation25_spill] sm:$0xff] %v2176_v31  ;;  %v889_v14 = vmax.f32 %v2185_v27, %v2173_v24  ;;  %v898_v15 = vmax.f32 %v2188_v56, %v2176_v31  ;;  %v961_v52 = vadd.f32 %v2173_v24, %v2185_v27 }
 0x367   : > { %2570 = vst [vmem:[#allocation27_spill] sm:$0xff] %v2194_v18  ;;  %v812_v35 = vpop.permute.xlu1 %811  ;;  %v797_v25 = vpop.permute.xlu0 %796  ;;  %v970_v26 = vadd.f32 %v2176_v31, %v2188_v56  ;;  %v854_v30 = vmax.f32 %v853_v45, %v2197_v19  ;;  %v926_v38 = vadd.f32 %v925_v4, %v2197_v19 }
 0x368   : > { %v2215_v7 = vmul.f32 %v812_v35, %v1963_v40  ;;  %v2218_v51 = vmul.f32 %v812_v35, %v1966_v41  ;;  %v2225_v32 = vmul.f32 %v797_v25, %v1953_v36  ;;  %v2228_v33 = vmul.f32 %v797_v25, %v1956_v37 }
 0x369   : > { %v863_v40 = vmax.f32 %v862_v63, %v2200_v0  ;;  %v935_v41 = vadd.f32 %v934_v53, %v2200_v0 }
 0x36a   : > { %2571 = vst [vmem:[#allocation28_spill] sm:$0xff] %v2215_v7  ;;  %2572 = vst [vmem:[#allocation29_spill] sm:$0xff] %v2218_v51  ;;  %v907_v48 = vmax.f32 %v2191_v58, %v2215_v7  ;;  %v916_v49 = vmax.f32 %v2194_v18, %v2218_v51  ;;  %v979_v36 = vadd.f32 %v2215_v7, %v2191_v58 }
 0x36b   : > { %2573 = vst [vmem:[#allocation30_spill] sm:$0xff] %v2225_v32  ;;  %2574 = vst [vmem:[#allocation31_spill] sm:$0xff] %v2228_v33  ;;  %v988_v37 = vadd.f32 %v2218_v51, %v2194_v18  ;;  %v778_v17 = vpop.permute.xlu1 %777  ;;  %v763_v54 = vpop.permute.xlu0 %762  ;;  %v890_v13 = vmax.f32 %v889_v14, %v2225_v32  ;;  %v899_v46 = vmax.f32 %v898_v15, %v2228_v33 }
 0x36c   : > { %v2243_v61 = vmul.f32 %v778_v17, %v1891_v12  ;;  %v2246_v29 = vmul.f32 %v778_v17, %v2575_v10  ;;  %v2249_v3 = vmul.f32 %v763_v54, %v2576_v57  ;;  %v2252_v47 = vmul.f32 %v763_v54, %v2577_v39 }
 0x36d   : > { %v962_v22 = vadd.f32 %v961_v52, %v2225_v32  ;;  %v971_v50 = vadd.f32 %v970_v26, %v2228_v33 }
 0x36e   : > { %v2259_v12 = vmax.f32 %v871_v1, %v2243_v61  ;;  %v2262_v42 = vmax.f32 %v880_v20, %v2246_v29  ;;  %v2265_v43 = vadd.f32 %v943_v21, %v2243_v61  ;;  %v2268_v44 = vadd.f32 %v952_v34, %v2246_v29  ;;  %v2578_v1 = vld [vmem:[#allocation20_spill] sm:$0xff]  ;;  %v2580_v20 = vld [vmem:[#allocation21_spill] sm:$0xff]  ;;  %v2582_v21 = vld [vmem:[#allocation18_spill] sm:$0xff] }
 0x36f   : > { %v855_v45 = vmax.f32 %v854_v30, %v2249_v3  ;;  %v864_v63 = vmax.f32 %v863_v40, %v2252_v47  ;;  %v927_v60 = vadd.f32 %v926_v38, %v2249_v3  ;;  %v936_v2 = vadd.f32 %v935_v41, %v2252_v47  ;;  %v816_v4 = vpop.permute.xlu1 %815  ;;  %v801_v53 = vpop.permute.xlu0 %800  ;;  %v2584_v34 = vld [vmem:[#allocation19_spill] sm:$0xff] }
 0x370   : > { %v2275_v35 = vmul.f32 %v816_v4, %v2578_v1  ;;  %v2278_v25 = vmul.f32 %v816_v4, %v2580_v20  ;;  %v2281_v14 = vmul.f32 %v801_v53, %v2582_v21  ;;  %v2284_v15 = vmul.f32 %v801_v53, %v2584_v34 }
 0x371   : > { %v856_v52 = vrot.slane %v855_v45, 4  ;;  %v865_v26 = vrot.slane %v864_v63, 4  ;;  %v928_v30 = vrot.slane %v927_v60, 4  ;;  %v937_v40 = vrot.slane %v936_v2, 4 }
 0x372   : > { %2579 = vst [vmem:[#allocation13_spill] sm:$0xff] %v2275_v35  ;;  %2581 = vst [vmem:[#allocation16_spill] sm:$0xff] %v2278_v25  ;;  %v2287_v38 = vmax.f32 %v907_v48, %v2275_v35  ;;  %v2290_v41 = vmax.f32 %v916_v49, %v2278_v25  ;;  %v2293_v17 = vadd.f32 %v979_v36, %v2275_v35 }
 0x373   : > { %2583 = vst [vmem:[#allocation17_spill] sm:$0xff] %v2281_v14  ;;  %2585 = vst [vmem:[#allocation20_spill] sm:$0xff] %v2284_v15  ;;  %v2296_v54 = vadd.f32 %v988_v37, %v2278_v25  ;;  %v857_v10 = vmax.f32 %v855_v45, %v856_v52  ;;  %v866_v57 = vmax.f32 %v864_v63, %v865_v26  ;;  %v782_v7 = vpop.permute.xlu1 %781 }
 0x374   : > { %v929_v39 = vadd.f32 %v928_v30, %v927_v60  ;;  %v938_v4 = vadd.f32 %v937_v40, %v936_v2  ;;  %v891_v53 = vmax.f32 %v890_v13, %v2281_v14  ;;  %v900_v1 = vmax.f32 %v899_v46, %v2284_v15 }
 0x375   : > { %v963_v48 = vadd.f32 %v962_v22, %v2281_v14  ;;  %v972_v20 = vadd.f32 %v971_v50, %v2284_v15  ;;  %v858_v49 = vrot.slane %v857_v10, 2  ;;  %v867_v21 = vrot.slane %v866_v57, 2 }
 0x376   : > { %v930_v34 = vrot.slane %v929_v39, 2  ;;  %v939_v36 = vrot.slane %v938_v4, 2  ;;  %v892_v35 = vrot.slane %v891_v53, 4  ;;  %v901_v51 = vrot.slane %v900_v1, 4 }
 0x377   : > { %v964_v37 = vrot.slane %v963_v48, 4  ;;  %v973_v25 = vrot.slane %v972_v20, 4  ;;  %v859_v45 = vmax.f32 %v857_v10, %v858_v49  ;;  %v868_v63 = vmax.f32 %v866_v57, %v867_v21 }
 0x378   : > { %v931_v60 = vadd.f32 %v930_v34, %v929_v39  ;;  %v940_v2 = vadd.f32 %v939_v36, %v938_v4  ;;  %v893_v52 = vmax.f32 %v891_v53, %v892_v35  ;;  %v902_v13 = vmax.f32 %v900_v1, %v901_v51  ;;  %v2586_v1 = vld [vmem:[#allocation14_spill] sm:$0xff] }
 0x379   : > { %v965_v26 = vadd.f32 %v964_v37, %v963_v48  ;;  %v974_v46 = vadd.f32 %v973_v25, %v972_v20  ;;  %v860_v30 = vrot.slane %v859_v45, 1  ;;  %v869_v22 = vrot.slane %v868_v63, 1  ;;  %v2587_v20 = vld [vmem:[#allocation15_spill] sm:$0xff] }
 0x37a   : > { %v932_v40 = vrot.slane %v931_v60, 1  ;;  %v941_v50 = vrot.slane %v940_v2, 1  ;;  %v894_v18 = vrot.slane %v893_v52, 2  ;;  %v903_v58 = vrot.slane %v902_v13, 2 }
 0x37b   : > { %v966_v15 = vrot.slane %v965_v26, 2  ;;  %v975_v14 = vrot.slane %v974_v46, 2  ;;  %v2302_v33 = vmax.f32 %v859_v45, %v860_v30  ;;  %v2304_v32 = vmax.f32 %v868_v63, %v869_v22  ;;  %v820_v45 = vpop.permute.xlu1 %819  ;;  %v2588_v30 = vld [vmem:[#allocation22_spill] sm:$0xff]  ;;  %v2590_v22 = vld [vmem:[#allocation23_spill] sm:$0xff] }
 0x37c   : > { %v933_v10 = vadd.f32 %v932_v40, %v931_v60  ;;  %v942_v57 = vadd.f32 %v941_v50, %v940_v2  ;;  %v895_v39 = vmax.f32 %v893_v52, %v894_v18  ;;  %v904_v35 = vmax.f32 %v902_v13, %v903_v58 }
 0x37d   : > { %v967_v51 = vadd.f32 %v966_v15, %v965_v26  ;;  %v976_v4 = vadd.f32 %v975_v14, %v974_v46  ;;  %v2311_v48 = vmul.f32 %v782_v7, %v2586_v1  ;;  %v2314_v49 = vmul.f32 %v782_v7, %v2587_v20 }
 0x37e   : > { %v2306_v25 = vmul.f32 0.03125, %v933_v10  ;;  %v2308_v53 = vmul.f32 0.03125, %v942_v57  ;;  %v896_v21 = vrot.slane %v895_v39, 1  ;;  %v905_v34 = vrot.slane %v904_v35, 1 }
 0x37f   : > { %v968_v36 = vrot.slane %v967_v51, 1  ;;  %v977_v37 = vrot.slane %v976_v4, 1  ;;  %v873_v18 = vmax.f32 %v2259_v12, %v2311_v48  ;;  %v882_v58 = vmax.f32 %v2262_v42, %v2314_v49 }
 0x380   : > { %v945_v14 = vadd.f32 %v2265_v43, %v2311_v48  ;;  %v954_v15 = vadd.f32 %v2268_v44, %v2314_v49  ;;  %v2324_v63 = vmax.f32 %v895_v39, %v896_v21  ;;  %v2326_v7 = vmax.f32 %v904_v35, %v905_v34 }
 0x381   : > { %v969_v60 = vadd.f32 %v968_v36, %v967_v51  ;;  %v978_v2 = vadd.f32 %v977_v37, %v976_v4  ;;  %v874_v52 = vrot.slane %v873_v18, 4  ;;  %v883_v13 = vrot.slane %v882_v58, 4 }
 0x382   : > { %v946_v26 = vrot.slane %v945_v14, 4  ;;  %v955_v12 = vrot.slane %v954_v15, 4  ;;  %v2333_v43 = vmul.f32 %v820_v45, %v2588_v30  ;;  %v2336_v44 = vmul.f32 %v820_v45, %v2590_v22 }
 0x383   : > { %v2328_v46 = vmul.f32 0.03125, %v969_v60  ;;  %v2330_v42 = vmul.f32 0.03125, %v978_v2  ;;  %v875_v40 = vmax.f32 %v873_v18, %v874_v52  ;;  %v884_v50 = vmax.f32 %v882_v58, %v883_v13 }
 0x384   : > { %2589 = vst [vmem:[#allocation21_spill] sm:$0xff] %v2333_v43  ;;  %2591 = vst [vmem:[#allocation18_spill] sm:$0xff] %v2336_v44  ;;  %v947_v10 = vadd.f32 %v946_v26, %v945_v14  ;;  %v956_v57 = vadd.f32 %v955_v12, %v954_v15  ;;  %v909_v39 = vmax.f32 %v2287_v38, %v2333_v43 }
 0x385   : > { %v918_v35 = vmax.f32 %v2290_v41, %v2336_v44  ;;  %v981_v51 = vadd.f32 %v2293_v17, %v2333_v43  ;;  %v990_v4 = vadd.f32 %v2296_v54, %v2336_v44  ;;  %v876_v1 = vrot.slane %v875_v40, 2 }
 0x386   : > { %v885_v20 = vrot.slane %v884_v50, 2  ;;  %v948_v21 = vrot.slane %v947_v10, 2  ;;  %v957_v34 = vrot.slane %v956_v57, 2  ;;  %v910_v36 = vrot.slane %v909_v39, 4 }
 0x387   : > { %v919_v37 = vrot.slane %v918_v35, 4  ;;  %v982_v18 = vrot.slane %v981_v51, 4  ;;  %v991_v58 = vrot.slane %v990_v4, 4  ;;  %v877_v14 = vmax.f32 %v875_v40, %v876_v1 }
 0x388   : > { %v886_v15 = vmax.f32 %v884_v50, %v885_v20  ;;  %v949_v38 = vadd.f32 %v948_v21, %v947_v10  ;;  %v958_v45 = vadd.f32 %v957_v34, %v956_v57  ;;  %v911_v60 = vmax.f32 %v909_v39, %v910_v36 }
 0x389   : > { %v920_v41 = vmax.f32 %v918_v35, %v919_v37  ;;  %v983_v2 = vadd.f32 %v982_v18, %v981_v51  ;;  %v992_v52 = vadd.f32 %v991_v58, %v990_v4  ;;  %v878_v17 = vrot.slane %v877_v14, 1 }
 0x38a   : > { %v887_v13 = vrot.slane %v886_v15, 1  ;;  %v950_v26 = vrot.slane %v949_v38, 1  ;;  %v959_v54 = vrot.slane %v958_v45, 1  ;;  %v912_v12 = vrot.slane %v911_v60, 2 }
 0x38b   : > { %v921_v30 = vrot.slane %v920_v41, 2  ;;  %v984_v22 = vrot.slane %v983_v2, 2  ;;  %v993_v44 = vrot.slane %v992_v52, 2  ;;  %v2346_v43 = vmax.f32 %v877_v14, %v878_v17 }
 0x38c   : > { %v888_v31 = vmax.f32 %v886_v15, %v887_v13  ;;  %v951_v24 = vadd.f32 %v950_v26, %v949_v38  ;;  %v960_v40 = vadd.f32 %v959_v54, %v958_v45  ;;  %v913_v50 = vmax.f32 %v911_v60, %v912_v12 }
 0x38d   : > { %v922_v10 = vmax.f32 %v920_v41, %v921_v30  ;;  %v985_v57 = vadd.f32 %v984_v22, %v983_v2  ;;  %v994_v39 = vadd.f32 %v993_v44, %v992_v52 }
 0x38e   : > { %v2348_v35 = vmul.f32 0.03125, %v951_v24  ;;  %v1001_v51 = vmul.f32 0.03125, %v960_v40  ;;  %v914_v4 = vrot.slane %v913_v50, 1 }
 0x38f   : > { %v923_v1 = vrot.slane %v922_v10, 1  ;;  %v986_v20 = vrot.slane %v985_v57, 1  ;;  %v995_v21 = vrot.slane %v994_v39, 1 }
 0x390   : > { %v2350_v34 = vmax.f32 %v913_v50, %v914_v4 }
 0x391   : > { %v924_v36 = vmax.f32 %v922_v10, %v923_v1  ;;  %v987_v37 = vadd.f32 %v986_v20, %v985_v57  ;;  %v996_v18 = vadd.f32 %v995_v21, %v994_v39 }
 0x393   : > { %v2352_v58 = vmul.f32 0.03125, %v987_v37  ;;  %v1005_v14 = vmul.f32 0.03125, %v996_v18 }
 0x394   : > { %1673 = dma.done.wait [#allocation3], 8192 }
 0x395   : > { %1674 = vsyncadd [#allocation3], 4294959104  ;;  %v1052_v24 = vpack.c.bf16 %v2308_v53, %v2308_v53  ;;  %v1054_v44 = vpack.c.bf16 %v1001_v51, %v1001_v51  ;;  %v1056_v15 = vpack.c.bf16 %v2330_v42, %v2330_v42  ;;  %v1058_v38 = vpack.c.bf16 %v1005_v14, %v1005_v14  ;;  %v1020_v50 = vld [vmem:[#allocation2 + $0x8] sm:$0xff]  ;;  %v1060_v10 = vld [vmem:[#allocation2 + $0x100] sm:$0xff]  ;;  %s1490_s14 = sshll.u32 %s1758_s19, 12  ;;  %s1384_s7 = sshll.u32 %s2356_s6, 4  ;;  %s2467_s7 = int_to_ptr.vmem [resolvable:$true] %s1384_s7 }
 0x396   : > { %v1012_v45 = vpack.c.bf16 %v2304_v32, %v2304_v32  ;;  %v1014_v60 = vpack.c.bf16 %v888_v31, %v888_v31  ;;  %v1016_v41 = vpack.c.bf16 %v2326_v7, %v2326_v7  ;;  %v1018_v2 = vpack.c.bf16 %v924_v36, %v924_v36  ;;  %v1061_v7 = vld [vmem:[#allocation2 + $0x108] sm:$0xff]  ;;  %1185 = vmatprep.subr.bf16.mxu1 %v1020_v50  ;;  %v1019_v51 = vld [vmem:[#allocation2] sm:$0xff]  ;;  %v1063_v4 = vld [vmem:[#allocation2 + $0x118] sm:$0xff]  ;;  %s2458_s20 = scalar_lea.hbm %s2524_s4, %s1490_s14  ;;  %s1370_s22 = scalar_lea.sflag [#allocation6], %s1841_s13 }
 0x397   : > { %v1101_v52 = vunpack.c.l.b16 %v1052_v24  ;;  %v1103_v17 = vunpack.c.l.b16 %v1054_v44  ;;  %v1105_v13 = vunpack.c.l.b16 %v1056_v15  ;;  %v1107_v26 = vunpack.c.l.b16 %v1058_v38  ;;  %1118 = vmatprep.subr.bf16.mxu0 %v1061_v7  ;;  %v1022_v1 = vld [vmem:[#allocation2 + $0x18] sm:$0xff]  ;;  %1186 = vmatpush1.bf16.msra.mxu1 %v1019_v51  ;;  %v1062_v21 = vld [vmem:[#allocation2 + $0x110] sm:$0xff]  ;;  %v1065_v37 = vld [vmem:[#allocation2 + $0x128] sm:$0xff]  ;;  %s1625_s8 = scalar_lea.vmem %s2467_s7, 4096  ;;  %p2606_p11 = scmp.ne.s32.totalorder %s2553_s27, 0 }
 0x398   : > { %v1168_v54 = vunpack.c.l.b16 %v1012_v45  ;;  %v1170_v12 = vunpack.c.l.b16 %v1014_v60  ;;  %v1172_v53 = vunpack.c.l.b16 %v1016_v41  ;;  %v1174_v30 = vunpack.c.l.b16 %v1018_v2  ;;  %1119 = vmatpush1.bf16.msra.mxu0 %v1060_v10  ;;  %1187 = vmatprep.subr.bf16.mxu1 %v1022_v1  ;;  %v1021_v36 = vld [vmem:[#allocation2 + $0x10] sm:$0xff]  ;;  %v1024_v18 = vld [vmem:[#allocation2 + $0x28] sm:$0xff]  ;;  %v1064_v14 = vld [vmem:[#allocation2 + $0x120] sm:$0xff]  ;;  %p1626_p6 = scmp.ne.s32.totalorder %s2467_s7, %s1625_s8  ;;  %s1710_s11 = smov [#allocation7]  }
 0x399   : > { %v1111_v22 = vsel %vm473_vm5, %v1103_v17, %v1101_v52  ;;  %1120 = vmatprep.subr.bf16.mxu0 %v1063_v4  ;;  %v1023_v24 = vld [vmem:[#allocation2 + $0x20] sm:$0xff]  ;;  %v1067_v44 = vld [vmem:[#allocation2 + $0x138] sm:$0xff]  ;;  %v1066_v38 = vld [vmem:[#allocation2 + $0x130] sm:$0xff]  ;;  %s1629_s12 = sshll.u32 %s1710_s11, 4  ;;  %s1630_s12 = int_to_ptr.vmem [resolvable:$false] %s1629_s12 }
 0x39a   : > { %v1112_v42 = vsel %vm475_vm6, %v1105_v13, %v1111_v22  ;;  %v1178_v40 = vsel %vm473_vm5, %v1170_v12, %v1168_v54  ;;  %v1026_v15 = vld [vmem:[#allocation2 + $0x38] sm:$0xff]  ;;  %v1025_v45 = vld [vmem:[#allocation2 + $0x30] sm:$0xff]  ;;  %v1069_v60 = vld [vmem:[#allocation2 + $0x148] sm:$0xff]  ;;  %p1627_p12 = pnand %p1626_p6, %p2606_p11  ;;  %s1631_s23 = scalar_lea.vmem %s1630_s12, 8192 }
 0x39b   : > { %v1113_v31 = vsel %vm477_vm9, %v1107_v26, %v1112_v42  ;;  %v1179_v32 = vsel %vm475_vm6, %v1172_v53, %v1178_v40  ;;  %1188 = vmatpush1.bf16.msra.mxu1 %v1021_v36  ;;  %v1028_v41 = vld [vmem:[#allocation2 + $0x48] sm:$0xff]  ;;  %v1068_v2 = vld [vmem:[#allocation2 + $0x140] sm:$0xff]  ;;  %v1071_v17 = vld [vmem:[#allocation2 + $0x158] sm:$0xff]  ;;  %p1632_p8 = scmp.lt.s32.totalorder %s2467_s7, %s1630_s12  ;;  %p1633_p10 = scmp.lt.s32.totalorder %s1631_s23, %s1625_s8 }
 0x39c   : > { %v1115_v57 = vpack.c.b16 %v1113_v31, %v1113_v31  ;;  %v1180_v39 = vsel %vm477_vm9, %v1174_v30, %v1179_v32  ;;  %1121 = vmatpush1.bf16.msra.mxu0 %v1062_v21  ;;  %1189 = vmatprep.subr.bf16.mxu1 %v1024_v18  ;;  %v1027_v52 = vld [vmem:[#allocation2 + $0x40] sm:$0xff]  ;;  %v1030_v13 = vld [vmem:[#allocation2 + $0x58] sm:$0xff]  ;;  %v1070_v26 = vld [vmem:[#allocation2 + $0x150] sm:$0xff]  ;;  %p1628_p13 = pneg %p1627_p12 }
 0x39d   : > { %v1182_v20 = vpack.c.b16 %v1180_v39, %v1180_v39  ;;  %1122 = vmatprep.subr.bf16.mxu0 %v1065_v37  ;;  %v1029_v54 = vld [vmem:[#allocation2 + $0x50] sm:$0xff]  ;;  %v1073_v12 = vld [vmem:[#allocation2 + $0x168] sm:$0xff]  ;;  %v1072_v30 = vld [vmem:[#allocation2 + $0x160] sm:$0xff]  ;;  %p1634_p0 = por %p1633_p10, %p1632_p8 }
 0x39e   : > { %1150 = vmatprep.mubr.bf16.mxu0 %v1115_v57  ;;  %v1032_v53 = vld [vmem:[#allocation2 + $0x68] sm:$0xff]  ;;  %v1031_v22 = vld [vmem:[#allocation2 + $0x60] sm:$0xff]  ;;  %v1075_v42 = vld [vmem:[#allocation2 + $0x178] sm:$0xff] }
 0x39f   : > { %1217 = vmatprep.mubr.bf16.mxu1 %v1182_v20  ;;  %1190 = vmatpush1.bf16.msra.mxu1 %v1023_v24  ;;  %v1034_v40 = vld [vmem:[#allocation2 + $0x78] sm:$0xff]  ;;  %v1074_v31 = vld [vmem:[#allocation2 + $0x170] sm:$0xff]  ;;  %v1077_v7 = vld [vmem:[#allocation2 + $0x188] sm:$0xff]  ;;  %p1635_p2 = pnand %p1634_p0, %p1628_p13 }
 0x3a0   : > { %1123 = vmatpush1.bf16.msra.mxu0 %v1064_v14  ;;  %1191 = vmatprep.subr.bf16.mxu1 %v1026_v15  ;;  %v1033_v32 = vld [vmem:[#allocation2 + $0x70] sm:$0xff]  ;;  %v1036_v50 = vld [vmem:[#allocation2 + $0x88] sm:$0xff]  ;;  %v1076_v10 = vld [vmem:[#allocation2 + $0x180] sm:$0xff] }
 0x3a1   : > { %1124 = vmatprep.subr.bf16.mxu0 %v1067_v44  ;;  %v1035_v57 = vld [vmem:[#allocation2 + $0x80] sm:$0xff]  ;;  %v1079_v39 = vld [vmem:[#allocation2 + $0x198] sm:$0xff]  ;;  %v1078_v4 = vld [vmem:[#allocation2 + $0x190] sm:$0xff] }
 0x3a2   : > { %v1038_v51 = vld [vmem:[#allocation2 + $0x98] sm:$0xff]  ;;  %v1037_v1 = vld [vmem:[#allocation2 + $0x90] sm:$0xff]  ;;  %v1081_v20 = vld [vmem:[#allocation2 + $0x1a8] sm:$0xff] }
 0x3a3   : > { %1192 = vmatpush1.bf16.msra.mxu1 %v1025_v45  ;;  %v1040_v21 = vld [vmem:[#allocation2 + $0xa8] sm:$0xff]  ;;  %v1080_v36 = vld [vmem:[#allocation2 + $0x1a0] sm:$0xff]  ;;  %v1083_v18 = vld [vmem:[#allocation2 + $0x1b8] sm:$0xff]  ;;  %v1051_v45 = vpack.c.bf16 %v2306_v25, %v2306_v25  ;;  %v1015_v25 = vpack.c.bf16 %v2324_v63, %v2324_v63 }
 0x3a4   : > { %1125 = vmatpush1.bf16.msra.mxu0 %v1066_v38  ;;  %1193 = vmatprep.subr.bf16.mxu1 %v1028_v41  ;;  %v1039_v37 = vld [vmem:[#allocation2 + $0xa0] sm:$0xff]  ;;  %v1042_v14 = vld [vmem:[#allocation2 + $0xb8] sm:$0xff]  ;;  %v1082_v24 = vld [vmem:[#allocation2 + $0x1b0] sm:$0xff]  ;;  %v1011_v41 = vpack.c.bf16 %v2302_v33, %v2302_v33 }
 0x3a5   : > { %1126 = vmatprep.subr.bf16.mxu0 %v1069_v60  ;;  %v1041_v44 = vld [vmem:[#allocation2 + $0xb0] sm:$0xff]  ;;  %v1085_v15 = vld [vmem:[#allocation2 + $0x1c8] sm:$0xff]  ;;  %v1053_v60 = vpack.c.bf16 %v2348_v35, %v2348_v35  ;;  %v1046_v35 = vld [vmem:[#allocation2 + $0xd8] sm:$0xff]  ;;  %v1171_v63 = vunpack.c.l.b16 %v1015_v25 }
 0x3a6   : > { %v1044_v38 = vld [vmem:[#allocation2 + $0xc8] sm:$0xff]  ;;  %v1167_v33 = vunpack.c.l.b16 %v1011_v41 }
 0x3a7   : > { %1194 = vmatpush1.bf16.msra.mxu1 %v1027_v52  ;;  %v1084_v52 = vld [vmem:[#allocation2 + $0x1c0] sm:$0xff] }
 0x3a8   : > { %1127 = vmatpush1.bf16.msra.mxu0 %v1068_v2  ;;  %1195 = vmatprep.subr.bf16.mxu1 %v1030_v13  ;;  %v1013_v2 = vpack.c.bf16 %v2346_v43, %v2346_v43  ;;  %v1055_v13 = vpack.c.bf16 %v2328_v46, %v2328_v46  ;;  %v1057_v43 = vpack.c.bf16 %v2352_v58, %v2352_v58  ;;  %v1086_v46 = vld [vmem:[#allocation2 + $0x1d0] sm:$0xff]  ;;  %v1088_v58 = vld [vmem:[#allocation2 + $0x1e0] sm:$0xff] }
 0x3a9   : > { %1128 = vmatprep.subr.bf16.mxu0 %v1071_v17  ;;  %v1043_v17 = vld [vmem:[#allocation2 + $0xc0] sm:$0xff] }
 0x3ab   : > { %1196 = vmatpush1.bf16.msra.mxu1 %v1029_v54  ;;  %v1100_v54 = vunpack.c.l.b16 %v1051_v45 }
 0x3ac   : > { %1129 = vmatpush1.bf16.msra.mxu0 %v1070_v26  ;;  %1197 = vmatprep.subr.bf16.mxu1 %v1032_v53  ;;  %v1087_v26 = vld [vmem:[#allocation2 + $0x1d8] sm:$0xff]  ;;  %v1169_v53 = vunpack.c.l.b16 %v1013_v2 }
 0x3ad   : > { %1130 = vmatprep.subr.bf16.mxu0 %v1073_v12  ;;  %v1102_v12 = vunpack.c.l.b16 %v1053_v60 }
 0x3af   : > { %1198 = vmatpush1.bf16.msra.mxu1 %v1031_v22  ;;  %v1045_v22 = vld [vmem:[#allocation2 + $0xd0] sm:$0xff] }
 0x3b0   : > { %1131 = vmatpush1.bf16.msra.mxu0 %v1072_v30  ;;  %1199 = vmatprep.subr.bf16.mxu1 %v1034_v40  ;;  %v1017_v30 = vpack.c.bf16 %v2350_v34, %v2350_v34  ;;  %v1089_v40 = vld [vmem:[#allocation2 + $0x1e8] sm:$0xff]  ;;  %v1047_v34 = vld [vmem:[#allocation2 + $0xe0] sm:$0xff] }
 0x3b1   : > { %1132 = vmatprep.subr.bf16.mxu0 %v1075_v42  ;;  %v1104_v42 = vunpack.c.l.b16 %v1055_v13 }
 0x3b3   : > { %1200 = vmatpush1.bf16.msra.mxu1 %v1033_v32  ;;  %v1108_v32 = vsel %vm473_vm5, %v1102_v12, %v1100_v54  ;;  %v1709_v12 = vmov 1966171168  }
 0x3b4   : > { %1133 = vmatpush1.bf16.msra.mxu0 %v1074_v31  ;;  %1201 = vmatprep.subr.bf16.mxu1 %v1036_v50  ;;  %v1048_v31 = vld [vmem:[#allocation2 + $0xe8] sm:$0xff]  ;;  %v1106_v50 = vunpack.c.l.b16 %v1057_v43 }
 0x3b5   : > { %1134 = vmatprep.subr.bf16.mxu0 %v1077_v7  ;;  %v1175_v7 = vsel %vm473_vm5, %v1169_v53, %v1167_v33  ;;  %v1242_v33 = vunpack.c.l.s4 %v1709_v12 }
 0x3b7   : > { %1202 = vmatpush1.bf16.msra.mxu1 %v1035_v57  ;;  %v1109_v57 = vsel %vm475_vm6, %v1104_v42, %v1108_v32  ;;  %v1243_v53 = vunpack.c.0.s8 %v1242_v33  ;;  %v2605_v33 = vld [vmem:[#allocation18_spill] sm:$0xff] }
 0x3b8   : > { %1135 = vmatpush1.bf16.msra.mxu0 %v1076_v10  ;;  %1203 = vmatprep.subr.bf16.mxu1 %v1038_v51  ;;  %v1173_v10 = vunpack.c.l.b16 %v1017_v30  ;;  %v1091_v51 = vld [vmem:[#allocation2 + $0x1f8] sm:$0xff] }
 0x3b9   : > { %1136 = vmatprep.subr.bf16.mxu0 %v1079_v39  ;;  %v1176_v39 = vsel %vm475_vm6, %v1171_v63, %v1175_v7  ;;  %v1246_v30 = vsub.s32 %v1243_v53, %v2044_v62 }
 0x3bb   : > { %1204 = vmatpush1.bf16.msra.mxu1 %v1037_v1  ;;  %v1110_v1 = vsel %vm477_vm9, %v1106_v50, %v1109_v57 }
 0x3bc   : > { %1137 = vmatpush1.bf16.msra.mxu0 %v1078_v4  ;;  %1205 = vmatprep.subr.bf16.mxu1 %v1040_v21  ;;  %v1050_v4 = vld [vmem:[#allocation2 + $0xf8] sm:$0xff]  ;;  %v1090_v21 = vld [vmem:[#allocation2 + $0x1f0] sm:$0xff] }
 0x3bd   : > { %1138 = vmatprep.subr.bf16.mxu0 %v1081_v20  ;;  %v1177_v20 = vsel %vm477_vm9, %v1173_v10, %v1176_v39 }
 0x3bf   : > { %1206 = vmatpush1.bf16.msra.mxu1 %v1039_v37  ;;  %v1114_v37 = vpack.c.b16 %v1110_v1, %v1110_v1 }
 0x3c0   : > { %1139 = vmatpush1.bf16.msra.mxu0 %v1080_v36  ;;  %1207 = vmatprep.subr.bf16.mxu1 %v1042_v14  ;;  %v1049_v36 = vld [vmem:[#allocation2 + $0xf0] sm:$0xff] }
 0x3c1   : > { %1140 = vmatprep.subr.bf16.mxu0 %v1083_v18  ;;  %v1181_v18 = vpack.c.b16 %v1177_v20, %v1177_v20 }
 0x3c3   : > { %1208 = vmatpush1.bf16.msra.mxu1 %v1041_v44 }
 0x3c4   : > { %1141 = vmatpush1.bf16.msra.mxu0 %v1082_v24  ;;  %1209 = vmatprep.subr.bf16.mxu1 %v1044_v38 }
 0x3c5   : > { %1142 = vmatprep.subr.bf16.mxu0 %v1085_v15 }
 0x3c7   : > { %1210 = vmatpush1.bf16.msra.mxu1 %v1043_v17 }
 0x3c8   : > { %1143 = vmatpush1.bf16.msra.mxu0 %v1084_v52  ;;  %1211 = vmatprep.subr.bf16.mxu1 %v1046_v35 }
 0x3c9   : > { %1144 = vmatprep.subr.bf16.mxu0 %v1087_v26 }
 0x3cb   : > { %1212 = vmatpush1.bf16.msra.mxu1 %v1045_v22 }
 0x3cc   : > { %1145 = vmatpush1.bf16.msra.mxu0 %v1086_v46  ;;  %1213 = vmatprep.subr.bf16.mxu1 %v1048_v31 }
 0x3cd   : > { %1146 = vmatprep.subr.bf16.mxu0 %v1089_v40 }
 0x3cf   : > { %1214 = vmatpush1.bf16.msra.mxu1 %v1047_v34 }
 0x3d0   : > { %1147 = vmatpush1.bf16.msra.mxu0 %v1088_v58  ;;  %1215 = vmatprep.subr.bf16.mxu1 %v1050_v4 }
 0x3d1   : > { %1148 = vmatprep.subr.bf16.mxu0 %v1091_v51 }
 0x3d3   : > { %1216 = vmatpush1.bf16.msra.mxu1 %v1049_v36 }
 0x3d4   : > { %1149 = vmatpush1.bf16.msra.mxu0 %v1090_v21 }
 0x3d6   : > { %1218 = vmatmul.mubr.bf16.vlgmr.msra.gmra.mrb[4].mxu1 %v1181_v18 }
 0x3d7   : > { %1151 = vmatmul.mubr.bf16.vlgmr.msra.gmra.mrb[4].mxu0 %v1114_v37 }
 0x4a9   : > { %v1219_v24 = vpop.f32.mrb[4].mxu1 }
 0x4aa   : > { %v1152_v14 = vpop.f32.mrb[4].mxu0  ;;  %v1221_v38 = vpop.f32.mrb[5].mxu1 }
 0x4ab   : > { %v1220_v44 = vadd.f32 %v1219_v24, %v1152_v14  ;;  %v1154_v15 = vpop.f32.mrb[5].mxu0  ;;  %v1223_v41 = vpop.f32.mrb[6].mxu1  ;;  %v2596_v14 = vld [vmem:[#allocation17_spill] sm:$0xff]  ;;  %v2597_v24 = vld [vmem:[#allocation20_spill] sm:$0xff] }
 0x4ac   : > { %v1222_v45 = vadd.f32 %v1221_v38, %v1154_v15  ;;  %v1156_v60 = vpop.f32.mrb[6].mxu0  ;;  %v1224_v17 = vpop.f32.mrb[7].mxu1  ;;  %v2598_v15 = vld [vmem:[#allocation26_spill] sm:$0xff]  ;;  %v2600_v41 = vld [vmem:[#allocation28_spill] sm:$0xff] }
 0x4ad   : > { %v1478_v2 = vmul.f32 -1.442695, %v1220_v44  ;;  %v1157_v52 = vpop.f32.mrb[7].mxu0 }
 0x4ae   : > { %v1479_v13 = vmul.f32 -1.442695, %v1222_v45  ;;  %v2599_v45 = vld [vmem:[#allocation27_spill] sm:$0xff]  ;;  %v2601_v52 = vld [vmem:[#allocation29_spill] sm:$0xff] }
 0x4af   : > { %1587 = vpow2.f32 %v1478_v2 }
 0x4b0   : > { %1589 = vpow2.f32 %v1479_v13  ;;  %v2602_v13 = vld [vmem:[#allocation13_spill] sm:$0xff] }
 0x4b9   : > { %v1588_v25 = vpop.eup %1587 }
 0x4ba   : > { %v1590_v26 = vpop.eup %1589  ;;  %v1232_v35 = vadd.f32 1.0, %v1588_v25 }
 0x4bb   : > { %v1233_v54 = vadd.f32 1.0, %v1590_v26  ;;  %v2603_v26 = vld [vmem:[#allocation16_spill] sm:$0xff] }
 0x4bc   : > { %1591 = vrcp.f32 %v1232_v35 }
 0x4bd   : > { %1593 = vrcp.f32 %v1233_v54  ;;  %v2604_v54 = vld [vmem:[#allocation21_spill] sm:$0xff] }
 0x4c6   : > { %v1592_v43 = vpop.eup %1591 }
 0x4c7   : > { %v1594_v46 = vpop.eup %1593 }
 0x4c8   : > { %v1240_v22 = vcombine.low %v1592_v43, %v1594_v46 }
 0x4ca   : > { %v1247_v42 = vrot.slane %v1240_v22, %v1246_v30 }
 0x4cc   : > { %v1248_v63 = vcombine.high %v1247_v42, %v1247_v42  ;;  %v1255_v40 = vrot.slane %v1247_v42, %v1246_v30 }
 0x4ce   : > { %v1262_v31 = vrot.slane %v1248_v63, %v1246_v30  ;;  %v1263_v32 = vcombine.high %v1255_v40, %v1255_v40  ;;  %v1268_v7 = vrot.slane %v1255_v40, %v2137_v59  ;;  %v1272_v50 = vrot.slane %v1255_v40, %v2141_v28 }
 0x4d0   : > { %v1264_v10 = vcombine.high %v1262_v31, %v1262_v31  ;;  %v1276_v58 = vrot.slane %v1262_v31, %v2137_v59  ;;  %v1280_v34 = vrot.slane %v1262_v31, %v2141_v28  ;;  %v1284_v62 = vrot.slane %v1263_v32, %v2137_v59 }
 0x4d1   : > { %v1288_v57 = vrot.slane %v1263_v32, %v2141_v28  ;;  %v1305_v39 = vmul.f32 %v1268_v7, %v2153_v11  ;;  %v1306_v51 = vmul.f32 %v1272_v50, %v2156_v23  ;;  %v1307_v4 = vmul.f32 %v1268_v7, %v2147_v55 }
 0x4d2   : > { %v1292_v1 = vrot.slane %v1264_v10, %v2137_v59  ;;  %v1296_v20 = vrot.slane %v1264_v10, %v2141_v28  ;;  %v1308_v21 = vmul.f32 %v1272_v50, %v2150_v16  ;;  %v1309_v36 = vmul.f32 %v1268_v7, %v2197_v19 }
 0x4d3   : > { %v1310_v37 = vmul.f32 %v1272_v50, %v2200_v0  ;;  %v1311_v18 = vmul.f32 %v1268_v7, %v2249_v3  ;;  %v1312_v11 = vmul.f32 %v1272_v50, %v2252_v47  ;;  %v1313_v55 = vmul.f32 %v1276_v58, %v2179_v5  ;;  %1337 = vst [vmem:[%s2356_s6] sm:$0xff] %v1305_v39  ;;  %v2594_v47 = vld [vmem:[#allocation30_spill] sm:$0xff] }
 0x4d4   : > { %1338 = vst [vmem:[%s2356_s6 + $0x8] sm:$0xff] %v1306_v51  ;;  %1339 = vst [vmem:[%s2356_s6 + $0x10] sm:$0xff] %v1307_v4  ;;  %v1314_v59 = vmul.f32 %v1280_v34, %v2182_v6  ;;  %v1315_v28 = vmul.f32 %v1276_v58, %v2163_v8  ;;  %v1316_v16 = vmul.f32 %v1280_v34, %v2166_v9  ;;  %v2592_v9 = vld [vmem:[#allocation24_spill] sm:$0xff] }
 0x4d5   : > { %v1317_v23 = vmul.f32 %v1276_v58, %v2243_v61  ;;  %1340 = vst [vmem:[%s2356_s6 + $0x18] sm:$0xff] %v1308_v21  ;;  %1341 = vst [vmem:[%s2356_s6 + $0x20] sm:$0xff] %v1309_v36  ;;  %v1318_v5 = vmul.f32 %v1280_v34, %v2246_v29  ;;  %v1319_v19 = vmul.f32 %v1276_v58, %v2311_v48  ;;  %v2593_v29 = vld [vmem:[#allocation25_spill] sm:$0xff] }
 0x4d6   : > { %v1320_v0 = vmul.f32 %v1280_v34, %v2314_v49  ;;  %v1321_v6 = vmul.f32 %v1284_v62, %v2185_v27  ;;  %1342 = vst [vmem:[%s2356_s6 + $0x28] sm:$0xff] %v1310_v37  ;;  %1343 = vst [vmem:[%s2356_s6 + $0x30] sm:$0xff] %v1311_v18  ;;  %v1322_v8 = vmul.f32 %v1288_v57, %v2188_v56  ;;  %v2595_v27 = vld [vmem:[#allocation31_spill] sm:$0xff] }
 0x4d7   : > { %1344 = vst [vmem:[%s2356_s6 + $0x38] sm:$0xff] %v1312_v11  ;;  %1345 = vst [vmem:[%s2356_s6 + $0x40] sm:$0xff] %v1313_v55  ;;  %v1323_v61 = vmul.f32 %v1284_v62, %v2592_v9  ;;  %v1324_v3 = vmul.f32 %v1288_v57, %v2593_v29  ;;  %v1325_v48 = vmul.f32 %v1284_v62, %v2594_v47 }
 0x4d8   : > { %1346 = vst [vmem:[%s2356_s6 + $0x48] sm:$0xff] %v1314_v59  ;;  %1347 = vst [vmem:[%s2356_s6 + $0x50] sm:$0xff] %v1315_v28  ;;  %v1326_v49 = vmul.f32 %v1288_v57, %v2595_v27  ;;  %v1327_v56 = vmul.f32 %v1284_v62, %v2596_v14  ;;  %v1328_v44 = vmul.f32 %v1288_v57, %v2597_v24 }
 0x4d9   : > { %1348 = vst [vmem:[%s2356_s6 + $0x58] sm:$0xff] %v1316_v16  ;;  %1349 = vst [vmem:[%s2356_s6 + $0x60] sm:$0xff] %v1317_v23  ;;  %v1329_v38 = vmul.f32 %v1292_v1, %v2598_v15  ;;  %v1330_v60 = vmul.f32 %v1296_v20, %v2599_v45  ;;  %v1331_v2 = vmul.f32 %v1292_v1, %v2600_v41 }
 0x4da   : > { %1350 = vst [vmem:[%s2356_s6 + $0x68] sm:$0xff] %v1318_v5  ;;  %1351 = vst [vmem:[%s2356_s6 + $0x70] sm:$0xff] %v1319_v19  ;;  %v1332_v17 = vmul.f32 %v1296_v20, %v2601_v52  ;;  %v1333_v25 = vmul.f32 %v1292_v1, %v2602_v13  ;;  %v1334_v35 = vmul.f32 %v1296_v20, %v2603_v26 }
 0x4db   : > { %1352 = vst [vmem:[%s2356_s6 + $0x78] sm:$0xff] %v1320_v0  ;;  %1353 = vst [vmem:[%s2356_s6 + $0x80] sm:$0xff] %v1321_v6  ;;  %v1335_v12 = vmul.f32 %v1292_v1, %v2604_v54  ;;  %v1336_v53 = vmul.f32 %v1296_v20, %v2605_v33 }
 0x4dc   : > { %1354 = vst [vmem:[%s2356_s6 + $0x88] sm:$0xff] %v1322_v8  ;;  %1355 = vst [vmem:[%s2356_s6 + $0x90] sm:$0xff] %v1323_v61 }
 0x4dd   : > { %1356 = vst [vmem:[%s2356_s6 + $0x98] sm:$0xff] %v1324_v3  ;;  %1357 = vst [vmem:[%s2356_s6 + $0xa0] sm:$0xff] %v1325_v48 }
 0x4de   : > { %1358 = vst [vmem:[%s2356_s6 + $0xa8] sm:$0xff] %v1326_v49  ;;  %1359 = vst [vmem:[%s2356_s6 + $0xb0] sm:$0xff] %v1327_v56 }
 0x4df   : > { %1360 = vst [vmem:[%s2356_s6 + $0xb8] sm:$0xff] %v1328_v44  ;;  %1361 = vst [vmem:[%s2356_s6 + $0xc0] sm:$0xff] %v1329_v38 }
 0x4e0   : > { %1362 = vst [vmem:[%s2356_s6 + $0xc8] sm:$0xff] %v1330_v60  ;;  %1363 = vst [vmem:[%s2356_s6 + $0xd0] sm:$0xff] %v1331_v2 }
 0x4e1   : > { %1364 = vst [vmem:[%s2356_s6 + $0xd8] sm:$0xff] %v1332_v17  ;;  %1365 = vst [vmem:[%s2356_s6 + $0xe0] sm:$0xff] %v1333_v25 }
 0x4e2   : > { %1366 = vst [vmem:[%s2356_s6 + $0xe8] sm:$0xff] %v1334_v35  ;;  %1367 = vst [vmem:[%s2356_s6 + $0xf0] sm:$0xff] %v1335_v12 }
 0x4e3   : > { %1368 = vst [vmem:[%s2356_s6 + $0xf8] sm:$0xff] %v1336_v53 }
 0x4e4   : > { %1638 = shalt.err (!%p1635_p2)
}
 0x4e5   : > { %s1639_s25 = scalar_lea.hbm %s2458_s20, 4096  ;;  %s1643_s30 = scalar_lea.hbm %s2524_s4, 8192 }
 0x4e6   : > { %p1640_p4 = scmp.ne.s32.totalorder %s2458_s20, %s1639_s25  ;;  %p1644_p9 = scmp.lt.u32.totalorder %s2458_s20, %s2524_s4 }
 0x4e7   : > { %p1645_p1 = scmp.lt.u32.totalorder %s1643_s30, %s1639_s25  ;;  %p1647_p6 = scmp.lt.u32.totalorder %s1639_s25, %s2458_s20 }
 0x4e8   : > { %p1641_p5 = pnand %p1640_p4, %p2606_p11 }
 0x4e9   : > { %p1646_p3 = por %p1645_p1, %p1644_p9 }
 0x4ea   : > { %p1642_p7 = pneg %p1641_p5 }
 0x4eb   : > { %p1648_p12 = por %p1647_p6, %p1646_p3 }
 0x4ed   : > { %p1649_p13 = pnand %p1648_p12, %p1642_p7 }
 0x4ef   : > { %1652 = shalt.err (!%p1649_p13)
}
 0x4f0   : > { %s1711_s14 = smov 16  }
 0x4f1   : > { %1524 = dma.vmem_to_hbm [thread:$0]  (%p2606_p11), %s2467_s7, 4096, %s2458_s20, %s1370_s22, %s1698_s10, %s1698_s10, %s1711_s14  }
 0x4f2 PF: > { %s1399_s19 = sand.u32 1, %s1681_s15   ;;  %p2607_p8 = scmp.ne.s32.totalorder %s2554_s28, 0 }
 0x4f3   : > { %p2608_p10 = scmp.ge.s32.totalorder %s1693_s18, 2  ;;  %s1400_s9 = scalar_lea.sflag [#allocation6], %s1399_s19 }
 0x4f5   : > { %p1531_p0 = pnand %p2608_p10, %p2607_p8 }
 0x4f7   : > { %1676 = dma.done.wait (!%p1531_p0), %s1400_s9, 4096  }
 0x4f8   : > { %1678 = vsyncadd (!%p1531_p0), %s1400_s9, 4294963200  ;;  %p17_p2 = scmp.ge.s32.totalorder %s1762_s21, 4   ;;  %s2609_s15 = smov %s1685_s16 }
 0x4f9   : > { %s2610_s16 = smov %s1689_s17  ;;  %s2611_s17 = smov %s1774_s24 }
 0x4fa   : > { %s2612_s18 = smov %s1762_s21  ;;  %19 = sbr.rel (!%p17_p2) target bundleno = 5 (0x5), region = 86 }
 0x501   :  { %1405 = vsyncpa [#allocation5], 1 }
 0x502   :  { %1407 = vsyncpa [#allocation5 + $0x1], 1 }
 0x503   :  { %1408 = vsyncpa [#allocation6], 1 }
 0x504   :  { %1410 = vsyncpa [#allocation6 + $0x1], 1 }
 0x505   :  { %1411 = vsyncmov [#allocation3] }
 0x508   :  { %s1412_s18 = vpop.sfrf %1411 }
 0x509   :  { %p1486_p11 = scmp.ne.s32.totalorder %s1412_s18, 0 }
 0x50b   :  { %1416 = shalt.err (%p1486_p11)  }

</bundles_post_ra>
